<compile_context>
chip_gen: v5e
topology: v5e:2x2
jax: 0.10.0
libtpu: 0.0.40
codegen_flags: <defaults>
</compile_context>

<pallas_src>
import functools

import numpy as np
import jax
import jax.numpy as jnp
from jax.experimental import pallas as pl
from jax.experimental.pallas import tpu as pltpu

EPS = 1e-5
F32 = jnp.float32
BF16 = jnp.bfloat16


# ---------------------------------------------------------------------------
# In-kernel helpers (traced inside the Pallas bodies)
# ---------------------------------------------------------------------------
def _bn_lane(v, n_ch, count):
    """BatchNorm2d(affine=False), training stats, on a lane-dense (R, L) slab.

    Lane l holds channel (l % n_ch); count = elements per channel.
    One slab pass for per-lane sum / sum-of-squares, then fold the L lane stats
    into n_ch channel stats with n_ch masked sums over a single (1, L) vector.
    Stats in f32; single-pass variance is fine at these O(1) magnitudes.
    """
    L = v.shape[-1]
    s1 = jnp.sum(v, axis=0, keepdims=True)              # (1, L)
    s2 = jnp.sum(v * v, axis=0, keepdims=True)          # (1, L)
    lane_c = jax.lax.broadcasted_iota(jnp.int32, (1, L), 1) % n_ch
    mean_l = jnp.zeros((1, L), F32)
    var_l = jnp.zeros((1, L), F32)
    for c in range(n_ch):                                # static & tiny
        m = (lane_c == c).astype(F32)                    # (1, L) channel mask
        m1 = jnp.sum(s1 * m, keepdims=True) / count      # (1, 1) channel mean
        m2 = jnp.sum(s2 * m, keepdims=True) / count
        mean_l = mean_l + m1 * m
        var_l = var_l + (m2 - m1 * m1) * m               # biased variance
    return (v - mean_l) * jax.lax.rsqrt(var_l + EPS)


def _conv3x3_banded(xpad_ref, wband_ref, B, H, W, Cin):
    """3x3 'same' conv (stride 1, no bias) as 3 banded MXU matmuls.

    xpad_ref : (B, H+2, W*Cin) f32 VMEM scratch; rows 0 / H+1 zero, 1..H = data.
    wband_ref: (3, W*Cin, W*Cout) bf16 banded weights (W zero-pad folded in).
    returns  : (B*H, W*Cout) float32, rows=(b,y), lanes=(x,cout).
    """
    xp = xpad_ref[...]                                   # (B, H+2, W*Cin) f32
    WCout = wband_ref.shape[-1]
    acc = jnp.zeros((B * H, WCout), F32)
    for ky in range(3):                                  # 3 matmuls, K = W*Cin
        lhs = xp[:, ky:ky + H, :].reshape(B * H, W * Cin).astype(BF16)
        acc = acc + jnp.dot(lhs, wband_ref[ky], preferred_element_type=F32)
    return acc


# ---------------------------------------------------------------------------
# Kernel: upsample branch, fully fused
#   conv3x3 -> BN -> ReLU -> [Up(bilinear x2) + 1x1] -> BN
#                          \-> [Up(bilinear x2) + 1x1 + BN] (residual)
#   -> add -> ReLU
# ---------------------------------------------------------------------------
def _upres_up_kernel(x_ref, wb1_ref, k2_ref, kres_ref, mh_ref, o_ref, xpad_ref,
                     *, B, H, W, Cin, Cout):
    WCin = W * Cin
    # H-halo only (W padding lives in the banded weights); zero just 2 rows.
    zrow = jnp.zeros((B, 1, WCin), F32)
    xpad_ref[:, 0:1, :] = zrow
    xpad_ref[:, H + 1:H + 2, :] = zrow
    xpad_ref[:, 1:H + 1, :] = x_ref[...]

    # conv1 + bn1 + relu, lane-dense throughout.
    h1 = jnp.maximum(
        _bn_lane(_conv3x3_banded(xpad_ref, wb1_ref, B, H, W, Cin),
                 Cin, float(B * H * W)), 0.0)            # (B*H, W*Cin) f32
    x_lane = x_ref[...].reshape(B * H, WCin)             # leading-dim merge only

    # Upsample + 1x1 for both paths: W-interp folded into the 1x1 weight
    # (lane-dense (W*Cin) -> (2W*Cout) matmul), H-interp as per-batch Mh matmul.
    mh = mh_ref[...]                                     # (2H, H) bf16

    def up_path(v_lane, k_ref):
        mid = jnp.dot(v_lane.astype(BF16), k_ref[...],
                      preferred_element_type=F32)        # (B*H, 2W*Cout)
        mid = mid.astype(BF16)
        rows = [jnp.dot(mh, mid[b * H:(b + 1) * H, :],
                        preferred_element_type=F32) for b in range(B)]
        return jnp.concatenate(rows, axis=0)             # (B*2H, 2W*Cout) f32

    y_main = up_path(h1, k2_ref)                         # conv2 path
    y_res = up_path(x_lane, kres_ref)                    # upLayer path
    n2 = float(B * 2 * H * 2 * W)
    out = jnp.maximum(_bn_lane(y_main, Cout, n2) + _bn_lane(y_res, Cout, n2),
                      0.0)
    o_ref[...] = out.astype(o_ref.dtype)                 # full 128-lane store


# ---------------------------------------------------------------------------
# Kernel: non-upsample branch, fully fused
#   conv3x3 -> BN -> ReLU -> conv3x3 -> BN -> +x -> ReLU
# ---------------------------------------------------------------------------
def _upres_plain_kernel(x_ref, wb1_ref, wb2_ref, o_ref, xpad_ref,
                        *, B, H, W, C):
    WC = W * C
    zrow = jnp.zeros((B, 1, WC), F32)
    xpad_ref[:, 0:1, :] = zrow
    xpad_ref[:, H + 1:H + 2, :] = zrow
    n = float(B * H * W)

    # conv1 + bn1 + relu
    xpad_ref[:, 1:H + 1, :] = x_ref[...]
    h1 = jnp.maximum(
        _bn_lane(_conv3x3_banded(xpad_ref, wb1_ref, B, H, W, C), C, n), 0.0)

    # conv2 + bn2 + identity residual + relu (reuse the same padded scratch;
    # the halo rows are still zero).
    xpad_ref[:, 1:H + 1, :] = h1.reshape(B, H, WC)
    out = (_bn_lane(_conv3x3_banded(xpad_ref, wb2_ref, B, H, W, C), C, n)
           + x_ref[...].reshape(B * H, WC))
    o_ref[...] = jnp.maximum(out, 0.0).astype(o_ref.dtype)


# ---------------------------------------------------------------------------
# Host-side (one-time) weight preparation
# ---------------------------------------------------------------------------
def _bilinear_matrix_1d(n_in, scale=2):
    """1-D bilinear interpolation matrix, align_corners=True, factor 2."""
    n_out = n_in * scale
    M = np.zeros((n_out, n_in), dtype=np.float32)
    if n_out == 1 or n_in == 1:
        M[:, 0] = 1.0
        return M
    for o in range(n_out):
        src = o * (n_in - 1) / (n_out - 1)
        lo = int(np.floor(src))
        hi = min(lo + 1, n_in - 1)
        frac = src - lo
        M[o, lo] += 1.0 - frac
        M[o, hi] += frac
    return M


def _banded_conv_weight(w_hwio, W):
    """Fold a (3,3,Cin,Cout) HWIO weight into 3 banded (W*Cin, W*Cout) matrices.

    Per vertical tap ky, the conv contribution on lane-dense rows is
        out[(b,y), x*Cout+co] += xpad_lane[b, y+ky, :] @ band[ky]
    The W-direction zero padding is folded into the band (out-of-range columns
    are simply absent).  Weight-only prep, done once on the host.
    """
    kh, kw, cin, cout = w_hwio.shape
    w_np = np.asarray(w_hwio, np.float32)
    band = np.zeros((kh, W * cin, W * cout), np.float32)
    for ky in range(kh):
        for x in range(W):
            for kx in range(kw):
                u = x + kx - 1                           # unpadded input column
                if 0 <= u < W:
                    band[ky, u * cin:(u + 1) * cin,
                         x * cout:(x + 1) * cout] = w_np[ky, kx]
    return band


def make_params(key, in_ch, out_ch, upsample, H, W):
    k1, k2_, k3 = jax.random.split(key, 3)
    w1 = 0.1 * jax.random.normal(k1, (3, 3, in_ch, in_ch), jnp.float32)
    p = {"w1": w1,
         "wband1": jnp.asarray(_banded_conv_weight(w1, W)).astype(BF16)}
    if upsample:
        w2 = 0.1 * jax.random.normal(k2_, (in_ch, out_ch), jnp.float32)
        w_res = 0.1 * jax.random.normal(k3, (in_ch, out_ch), jnp.float32)
        mh = jnp.asarray(_bilinear_matrix_1d(H), jnp.float32)   # (2H, H)
        mw = jnp.asarray(_bilinear_matrix_1d(W), jnp.float32)   # (2W, W)
        p.update(
            w2=w2, w_res=w_res, mh=mh, mw=mw,
            # fold the separable W-interpolation into the 1x1 weights (bf16)
            k2=jnp.kron(mw.T, w2).astype(BF16),        # (W*Cin, 2W*Cout)
            k_res=jnp.kron(mw.T, w_res).astype(BF16),  # (W*Cin, 2W*Cout)
            mh_dev=mh.astype(BF16),                    # (2H, H)
        )
    else:
        assert in_ch == out_ch, "identity residual needs in_ch == out_ch"
        w2 = 0.1 * jax.random.normal(k2_, (3, 3, in_ch, out_ch), jnp.float32)
        p.update(w2=w2,
                 wband2=jnp.asarray(_banded_conv_weight(w2, W)).astype(BF16))
    return p


# ---------------------------------------------------------------------------
# UpResBlock forward (Pallas) and pure-JAX reference
# ---------------------------------------------------------------------------
def up_res_block_nhwc(x_nhwc, params, upsample):
    """Core NHWC entry point (preferred: avoids NCHW<->NHWC HBM relayouts)."""
    B, H, W, Cin = x_nhwc.shape
    x_lane = x_nhwc.reshape(B, H, W * Cin)               # free row-major reshape
    cp = pltpu.CompilerParams(vmem_limit_bytes=32 * 1024 * 1024)
    if upsample:
        Cout = params["w2"].shape[1]
        out = pl.pallas_call(
            functools.partial(_upres_up_kernel, B=B, H=H, W=W, Cin=Cin,
                              Cout=Cout),
            out_shape=jax.ShapeDtypeStruct((B * 2 * H, 2 * W * Cout),
                                           x_nhwc.dtype),
            scratch_shapes=[pltpu.VMEM((B, H + 2, W * Cin), jnp.float32)],
            compiler_params=cp,
        )(x_lane, params["wband1"], params["k2"], params["k_res"],
          params["mh_dev"])
        return out.reshape(B, 2 * H, 2 * W, Cout)
    else:
        out = pl.pallas_call(
            functools.partial(_upres_plain_kernel, B=B, H=H, W=W, C=Cin),
            out_shape=jax.ShapeDtypeStruct((B * H, W * Cin), x_nhwc.dtype),
            scratch_shapes=[pltpu.VMEM((B, H + 2, W * Cin), jnp.float32)],
            compiler_params=cp,
        )(x_lane, params["wband1"], params["wband2"])
        return out.reshape(B, H, W, Cin)


@functools.partial(jax.jit, static_argnames=("upsample",))
def up_res_block(x_nchw, params, upsample):
    # NCHW boundary kept only for parity with the PyTorch module; production
    # callers should use up_res_block_nhwc directly.
    x = jnp.transpose(x_nchw, (0, 2, 3, 1))              # NCHW -> NHWC
    out = up_res_block_nhwc(x, params, upsample)
    return jnp.transpose(out, (0, 3, 1, 2))              # NHWC -> NCHW


def ref_up_res_block(x_nchw, params, upsample):
    x = jnp.transpose(x_nchw, (0, 2, 3, 1))

    def bn(t):
        m = t.mean(axis=(0, 1, 2), keepdims=True)
        v = jnp.mean((t - m) ** 2, axis=(0, 1, 2), keepdims=True)
        return (t - m) * jax.lax.rsqrt(v + EPS)

    def conv3(t, w):
        return jax.lax.conv_general_dilated(
            t, w, (1, 1), "SAME",
            dimension_numbers=("NHWC", "HWIO", "NHWC"))

    def up_then_1x1(t, w):
        t = jnp.einsum("ph,bhwc->bpwc", params["mh"], t)
        t = jnp.einsum("qw,bpwc->bpqc", params["mw"], t)
        return jnp.einsum("bhwc,cd->bhwd", t, w)

    out = jax.nn.relu(bn(conv3(x, params["w1"])))
    if upsample:
        out = up_then_1x1(out, params["w2"])
        res = bn(up_then_1x1(x, params["w_res"]))
    else:
        out = conv3(out, params["w2"])
        res = x
    out = jax.nn.relu(bn(out) + res)
    return jnp.transpose(out, (0, 3, 1, 2))


# ---------------------------------------------------------------------------
if __name__ == "__main__":
    key = jax.random.PRNGKey(0)
    kx, kp1, kp2 = jax.random.split(key, 3)

    # upsample=True branch: in_channel=8 -> out_channel=4, 16x16 -> 32x32
    B, Cin, Cout, H, W = 2, 8, 4, 16, 16
    x = jax.random.normal(kx, (B, Cin, H, W), jnp.float32)
    params_up = make_params(kp1, Cin, Cout, True, H, W)

    y = jax.block_until_ready(up_res_block(x, params_up, upsample=True))
    assert y.shape == (B, Cout, 2 * H, 2 * W)
    y_ref = ref_up_res_block(x, params_up, True)
    # tolerance sized for explicit bf16 MXU operands (~2^-9 rounding per matmul
    # across a 4-matmul chain); semantic errors would be O(1).
    np.testing.assert_allclose(np.asarray(y), np.asarray(y_ref),
                               atol=3e-2, rtol=3e-2)

    # upsample=False branch: identity residual, in_channel == out_channel
    params_id = make_params(kp2, Cin, Cin, False, H, W)
    y2 = jax.block_until_ready(up_res_block(x, params_id, upsample=False))
    assert y2.shape == (B, Cin, H, W)
    y2_ref = ref_up_res_block(x, params_id, False)
    np.testing.assert_allclose(np.asarray(y2), np.asarray(y2_ref),
                               atol=3e-2, rtol=3e-2)

    print("KERNEL_OK")
</pallas_src>

<mosaic_0001>
module attributes {stable_mosaic.version = 11 : i64} {
  func.func @_upres_up_kernel(%arg0: memref<2x16x128xf32, #tpu.memory_space<vmem>>, %arg1: memref<3x128x128xbf16, #tpu.memory_space<vmem>>, %arg2: memref<128x128xbf16, #tpu.memory_space<vmem>>, %arg3: memref<128x128xbf16, #tpu.memory_space<vmem>>, %arg4: memref<32x16xbf16, #tpu.memory_space<vmem>>, %arg5: memref<64x128xf32, #tpu.memory_space<vmem>>, %arg6: memref<2x18x128xf32, #tpu.memory_space<vmem>>) attributes {dimension_semantics = [], scalar_prefetch = 0 : i64, scratch_operands = 1 : i64, tpu.core_type = #tpu.core_type<tc>} {
    %cst = arith.constant 0.000000e+00 : f32
    %0 = vector.broadcast %cst : f32 to vector<2x1x128xf32>
    %c0 = arith.constant 0 : index
    %c0_0 = arith.constant 0 : index
    %c0_1 = arith.constant 0 : index
    %1 = vector.load %arg6[%c0, %c0_0, %c0_1] : memref<2x18x128xf32, #tpu.memory_space<vmem>>, vector<2x1x128xf32>
    tpu.vector_store %arg6[%c0, %c0_0, %c0_1], %0 {strides = array<i32>} : memref<2x18x128xf32, #tpu.memory_space<vmem>>, vector<2x1x128xf32>,
    %c0_2 = arith.constant 0 : index
    %c17 = arith.constant 17 : index
    %c0_3 = arith.constant 0 : index
    %2 = vector.load %arg6[%c0_2, %c17, %c0_3] : memref<2x18x128xf32, #tpu.memory_space<vmem>>, vector<2x1x128xf32>
    tpu.vector_store %arg6[%c0_2, %c17, %c0_3], %0 {strides = array<i32>} : memref<2x18x128xf32, #tpu.memory_space<vmem>>, vector<2x1x128xf32>,
    %c0_4 = arith.constant 0 : index
    %c0_5 = arith.constant 0 : index
    %c0_6 = arith.constant 0 : index
    %3 = vector.load %arg0[%c0_4, %c0_5, %c0_6] : memref<2x16x128xf32, #tpu.memory_space<vmem>>, vector<2x16x128xf32>
    %c0_7 = arith.constant 0 : index
    %c1 = arith.constant 1 : index
    %c0_8 = arith.constant 0 : index
    %4 = vector.load %arg6[%c0_7, %c1, %c0_8] : memref<2x18x128xf32, #tpu.memory_space<vmem>>, vector<2x16x128xf32>
    tpu.vector_store %arg6[%c0_7, %c1, %c0_8], %3 {strides = array<i32>} : memref<2x18x128xf32, #tpu.memory_space<vmem>>, vector<2x16x128xf32>,
    %c0_9 = arith.constant 0 : index
    %c0_10 = arith.constant 0 : index
    %c0_11 = arith.constant 0 : index
    %5 = vector.load %arg6[%c0_9, %c0_10, %c0_11] : memref<2x18x128xf32, #tpu.memory_space<vmem>>, vector<2x18x128xf32>
    %cst_12 = arith.constant 0.000000e+00 : f32
    %6 = vector.broadcast %cst_12 : f32 to vector<32x128xf32>
    %7 = vector.extract_strided_slice %5 {offsets = [0, 0, 0], sizes = [2, 16, 128], strides = [1, 1, 1]} : vector<2x18x128xf32> to vector<2x16x128xf32>
    %8 = vector.shape_cast %7 : vector<2x16x128xf32> to vector<32x128xf32>
    %9 = arith.truncf %8 : vector<32x128xf32> to vector<32x128xbf16>
    %c0_13 = arith.constant 0 : index
    %c0_14 = arith.constant 0 : index
    %c0_15 = arith.constant 0 : index
    %10 = vector.load %arg1[%c0_13, %c0_14, %c0_15] : memref<3x128x128xbf16, #tpu.memory_space<vmem>>, vector<1x128x128xbf16>
    %11 = vector.shape_cast %10 : vector<1x128x128xbf16> to vector<128x128xbf16>
    %cst_16 = arith.constant dense<0.000000e+00> : vector<32x128xf32>
    %12 = tpu.matmul %9, %11, %cst_16 {dimension_numbers = #tpu.dot_dimension_numbers<[1], [0], [0], [1], [0, 0, 1, 1], [], []>} : vector<32x128xbf16>, vector<128x128xbf16>, vector<32x128xf32> -> vector<32x128xf32>
    %13 = arith.addf %6, %12 : vector<32x128xf32>
    %14 = vector.extract_strided_slice %5 {offsets = [0, 1, 0], sizes = [2, 16, 128], strides = [1, 1, 1]} : vector<2x18x128xf32> to vector<2x16x128xf32>
    %15 = vector.shape_cast %14 : vector<2x16x128xf32> to vector<32x128xf32>
    %16 = arith.truncf %15 : vector<32x128xf32> to vector<32x128xbf16>
    %c1_17 = arith.constant 1 : index
    %c0_18 = arith.constant 0 : index
    %c0_19 = arith.constant 0 : index
    %17 = vector.load %arg1[%c1_17, %c0_18, %c0_19] : memref<3x128x128xbf16, #tpu.memory_space<vmem>>, vector<1x128x128xbf16>
    %18 = vector.shape_cast %17 : vector<1x128x128xbf16> to vector<128x128xbf16>
    %cst_20 = arith.constant dense<0.000000e+00> : vector<32x128xf32>
    %19 = tpu.matmul %16, %18, %cst_20 {dimension_numbers = #tpu.dot_dimension_numbers<[1], [0], [0], [1], [0, 0, 1, 1], [], []>} : vector<32x128xbf16>, vector<128x128xbf16>, vector<32x128xf32> -> vector<32x128xf32>
    %20 = arith.addf %13, %19 : vector<32x128xf32>
    %21 = vector.extract_strided_slice %5 {offsets = [0, 2, 0], sizes = [2, 16, 128], strides = [1, 1, 1]} : vector<2x18x128xf32> to vector<2x16x128xf32>
    %22 = vector.shape_cast %21 : vector<2x16x128xf32> to vector<32x128xf32>
    %23 = arith.truncf %22 : vector<32x128xf32> to vector<32x128xbf16>
    %c2 = arith.constant 2 : index
    %c0_21 = arith.constant 0 : index
    %c0_22 = arith.constant 0 : index
    %24 = vector.load %arg1[%c2, %c0_21, %c0_22] : memref<3x128x128xbf16, #tpu.memory_space<vmem>>, vector<1x128x128xbf16>
    %25 = vector.shape_cast %24 : vector<1x128x128xbf16> to vector<128x128xbf16>
    %cst_23 = arith.constant dense<0.000000e+00> : vector<32x128xf32>
    %26 = tpu.matmul %23, %25, %cst_23 {dimension_numbers = #tpu.dot_dimension_numbers<[1], [0], [0], [1], [0, 0, 1, 1], [], []>} : vector<32x128xbf16>, vector<128x128xbf16>, vector<32x128xf32> -> vector<32x128xf32>
    %27 = arith.addf %20, %26 : vector<32x128xf32>
    %cst_24 = arith.constant dense<0.000000e+00> : vector<128xf32>
    %28 = vector.multi_reduction <add>, %27, %cst_24 [0] : vector<32x128xf32> to vector<128xf32>
    %29 = vector.shape_cast %28 : vector<128xf32> to vector<1x128xf32>
    %30 = arith.mulf %27, %27 : vector<32x128xf32>
    %cst_25 = arith.constant dense<0.000000e+00> : vector<128xf32>
    %31 = vector.multi_reduction <add>, %30, %cst_25 [0] : vector<32x128xf32> to vector<128xf32>
    %32 = vector.shape_cast %31 : vector<128xf32> to vector<1x128xf32>
    %33 = tpu.iota {dimensions = array<i32: 1>} : vector<1x128xi32>
    %c8_i32 = arith.constant 8 : i32
    %c0_i32 = arith.constant 0 : i32
    %34 = arith.cmpi eq, %c8_i32, %c0_i32 : i32
    %c1_i32 = arith.constant 1 : i32
    %35 = arith.select %34, %c1_i32, %c8_i32 : i32
    %36 = vector.broadcast %35 : i32 to vector<1x128xi32>
    %37 = arith.remsi %33, %36 : vector<1x128xi32>
    %c0_i32_26 = arith.constant 0 : i32
    %38 = vector.broadcast %c0_i32_26 : i32 to vector<1x128xi32>
    %39 = arith.cmpi ne, %37, %38 : vector<1x128xi32>
    %c0_i32_27 = arith.constant 0 : i32
    %40 = vector.broadcast %c0_i32_27 : i32 to vector<1x128xi32>
    %41 = arith.cmpi slt, %37, %40 : vector<1x128xi32>
    %c0_i32_28 = arith.constant 0 : i32
    %42 = arith.cmpi slt, %35, %c0_i32_28 : i32
    %43 = vector.broadcast %42 : i1 to vector<1x128xi1>
    %44 = vector.broadcast %43 : vector<1x128xi1> to vector<1x128xi1>
    %45 = arith.xori %41, %44 : vector<1x128xi1>
    %46 = arith.andi %45, %39 : vector<1x128xi1>
    %47 = vector.broadcast %35 : i32 to vector<1x128xi32>
    %48 = arith.addi %37, %47 : vector<1x128xi32>
    %49 = arith.select %46, %48, %37 : vector<1x128xi1>, vector<1x128xi32>
    %cst_29 = arith.constant 0.000000e+00 : f32
    %50 = vector.broadcast %cst_29 : f32 to vector<1x128xf32>
    %cst_30 = arith.constant 0.000000e+00 : f32
    %51 = vector.broadcast %cst_30 : f32 to vector<1x128xf32>
    %c0_i32_31 = arith.constant 0 : i32
    %52 = vector.broadcast %c0_i32_31 : i32 to vector<1x128xi32>
    %53 = arith.cmpi eq, %49, %52 : vector<1x128xi32>
    %54 = arith.extui %53 : vector<1x128xi1> to vector<1x128xi32>
    %55 = arith.sitofp %54 : vector<1x128xi32> to vector<1x128xf32>
    %56 = arith.mulf %29, %55 : vector<1x128xf32>
    %57 = vector.shape_cast %56 : vector<1x128xf32> to vector<1x1x128xf32>
    %cst_32 = arith.constant dense<0.000000e+00> : vector<1xf32>
    %58 = vector.multi_reduction <add>, %57, %cst_32 [1, 2] : vector<1x1x128xf32> to vector<1xf32>
    %59 = vector.shape_cast %58 : vector<1xf32> to vector<1x1x1xf32>
    %60 = vector.extract %59[0, 0, 0] : f32 from vector<1x1x1xf32>
    %61 = vector.broadcast %60 : f32 to vector<1x1xf32>
    %cst_33 = arith.constant 5.120000e+02 : f32
    %62 = vector.broadcast %cst_33 : f32 to vector<1x1xf32>
    %63 = arith.divf %61, %62 : vector<1x1xf32>
    %64 = arith.mulf %32, %55 : vector<1x128xf32>
    %65 = vector.shape_cast %64 : vector<1x128xf32> to vector<1x1x128xf32>
    %cst_34 = arith.constant dense<0.000000e+00> : vector<1xf32>
    %66 = vector.multi_reduction <add>, %65, %cst_34 [1, 2] : vector<1x1x128xf32> to vector<1xf32>
    %67 = vector.shape_cast %66 : vector<1xf32> to vector<1x1x1xf32>
    %68 = vector.extract %67[0, 0, 0] : f32 from vector<1x1x1xf32>
    %69 = vector.broadcast %68 : f32 to vector<1x1xf32>
    %cst_35 = arith.constant 5.120000e+02 : f32
    %70 = vector.broadcast %cst_35 : f32 to vector<1x1xf32>
    %71 = arith.divf %69, %70 : vector<1x1xf32>
    %72 = vector.broadcast %63 : vector<1x1xf32> to vector<1x128xf32>
    %73 = arith.mulf %72, %55 : vector<1x128xf32>
    %74 = arith.addf %50, %73 : vector<1x128xf32>
    %75 = arith.mulf %63, %63 : vector<1x1xf32>
    %76 = arith.subf %71, %75 : vector<1x1xf32>
    %77 = vector.broadcast %76 : vector<1x1xf32> to vector<1x128xf32>
    %78 = arith.mulf %77, %55 : vector<1x128xf32>
    %79 = arith.addf %51, %78 : vector<1x128xf32>
    %c1_i32_36 = arith.constant 1 : i32
    %80 = vector.broadcast %c1_i32_36 : i32 to vector<1x128xi32>
    %81 = arith.cmpi eq, %49, %80 : vector<1x128xi32>
    %82 = arith.extui %81 : vector<1x128xi1> to vector<1x128xi32>
    %83 = arith.sitofp %82 : vector<1x128xi32> to vector<1x128xf32>
    %84 = arith.mulf %29, %83 : vector<1x128xf32>
    %85 = vector.shape_cast %84 : vector<1x128xf32> to vector<1x1x128xf32>
    %cst_37 = arith.constant dense<0.000000e+00> : vector<1xf32>
    %86 = vector.multi_reduction <add>, %85, %cst_37 [1, 2] : vector<1x1x128xf32> to vector<1xf32>
    %87 = vector.shape_cast %86 : vector<1xf32> to vector<1x1x1xf32>
    %88 = vector.extract %87[0, 0, 0] : f32 from vector<1x1x1xf32>
    %89 = vector.broadcast %88 : f32 to vector<1x1xf32>
    %cst_38 = arith.constant 5.120000e+02 : f32
    %90 = vector.broadcast %cst_38 : f32 to vector<1x1xf32>
    %91 = arith.divf %89, %90 : vector<1x1xf32>
    %92 = arith.mulf %32, %83 : vector<1x128xf32>
    %93 = vector.shape_cast %92 : vector<1x128xf32> to vector<1x1x128xf32>
    %cst_39 = arith.constant dense<0.000000e+00> : vector<1xf32>
    %94 = vector.multi_reduction <add>, %93, %cst_39 [1, 2] : vector<1x1x128xf32> to vector<1xf32>
    %95 = vector.shape_cast %94 : vector<1xf32> to vector<1x1x1xf32>
    %96 = vector.extract %95[0, 0, 0] : f32 from vector<1x1x1xf32>
    %97 = vector.broadcast %96 : f32 to vector<1x1xf32>
    %cst_40 = arith.constant 5.120000e+02 : f32
    %98 = vector.broadcast %cst_40 : f32 to vector<1x1xf32>
    %99 = arith.divf %97, %98 : vector<1x1xf32>
    %100 = vector.broadcast %91 : vector<1x1xf32> to vector<1x128xf32>
    %101 = arith.mulf %100, %83 : vector<1x128xf32>
    %102 = arith.addf %74, %101 : vector<1x128xf32>
    %103 = arith.mulf %91, %91 : vector<1x1xf32>
    %104 = arith.subf %99, %103 : vector<1x1xf32>
    %105 = vector.broadcast %104 : vector<1x1xf32> to vector<1x128xf32>
    %106 = arith.mulf %105, %83 : vector<1x128xf32>
    %107 = arith.addf %79, %106 : vector<1x128xf32>
    %c2_i32 = arith.constant 2 : i32
    %108 = vector.broadcast %c2_i32 : i32 to vector<1x128xi32>
    %109 = arith.cmpi eq, %49, %108 : vector<1x128xi32>
    %110 = arith.extui %109 : vector<1x128xi1> to vector<1x128xi32>
    %111 = arith.sitofp %110 : vector<1x128xi32> to vector<1x128xf32>
    %112 = arith.mulf %29, %111 : vector<1x128xf32>
    %113 = vector.shape_cast %112 : vector<1x128xf32> to vector<1x1x128xf32>
    %cst_41 = arith.constant dense<0.000000e+00> : vector<1xf32>
    %114 = vector.multi_reduction <add>, %113, %cst_41 [1, 2] : vector<1x1x128xf32> to vector<1xf32>
    %115 = vector.shape_cast %114 : vector<1xf32> to vector<1x1x1xf32>
    %116 = vector.extract %115[0, 0, 0] : f32 from vector<1x1x1xf32>
    %117 = vector.broadcast %116 : f32 to vector<1x1xf32>
    %cst_42 = arith.constant 5.120000e+02 : f32
    %118 = vector.broadcast %cst_42 : f32 to vector<1x1xf32>
    %119 = arith.divf %117, %118 : vector<1x1xf32>
    %120 = arith.mulf %32, %111 : vector<1x128xf32>
    %121 = vector.shape_cast %120 : vector<1x128xf32> to vector<1x1x128xf32>
    %cst_43 = arith.constant dense<0.000000e+00> : vector<1xf32>
    %122 = vector.multi_reduction <add>, %121, %cst_43 [1, 2] : vector<1x1x128xf32> to vector<1xf32>
    %123 = vector.shape_cast %122 : vector<1xf32> to vector<1x1x1xf32>
    %124 = vector.extract %123[0, 0, 0] : f32 from vector<1x1x1xf32>
    %125 = vector.broadcast %124 : f32 to vector<1x1xf32>
    %cst_44 = arith.constant 5.120000e+02 : f32
    %126 = vector.broadcast %cst_44 : f32 to vector<1x1xf32>
    %127 = arith.divf %125, %126 : vector<1x1xf32>
    %128 = vector.broadcast %119 : vector<1x1xf32> to vector<1x128xf32>
    %129 = arith.mulf %128, %111 : vector<1x128xf32>
    %130 = arith.addf %102, %129 : vector<1x128xf32>
    %131 = arith.mulf %119, %119 : vector<1x1xf32>
    %132 = arith.subf %127, %131 : vector<1x1xf32>
    %133 = vector.broadcast %132 : vector<1x1xf32> to vector<1x128xf32>
    %134 = arith.mulf %133, %111 : vector<1x128xf32>
    %135 = arith.addf %107, %134 : vector<1x128xf32>
    %c3_i32 = arith.constant 3 : i32
    %136 = vector.broadcast %c3_i32 : i32 to vector<1x128xi32>
    %137 = arith.cmpi eq, %49, %136 : vector<1x128xi32>
    %138 = arith.extui %137 : vector<1x128xi1> to vector<1x128xi32>
    %139 = arith.sitofp %138 : vector<1x128xi32> to vector<1x128xf32>
    %140 = arith.mulf %29, %139 : vector<1x128xf32>
    %141 = vector.shape_cast %140 : vector<1x128xf32> to vector<1x1x128xf32>
    %cst_45 = arith.constant dense<0.000000e+00> : vector<1xf32>
    %142 = vector.multi_reduction <add>, %141, %cst_45 [1, 2] : vector<1x1x128xf32> to vector<1xf32>
    %143 = vector.shape_cast %142 : vector<1xf32> to vector<1x1x1xf32>
    %144 = vector.extract %143[0, 0, 0] : f32 from vector<1x1x1xf32>
    %145 = vector.broadcast %144 : f32 to vector<1x1xf32>
    %cst_46 = arith.constant 5.120000e+02 : f32
    %146 = vector.broadcast %cst_46 : f32 to vector<1x1xf32>
    %147 = arith.divf %145, %146 : vector<1x1xf32>
    %148 = arith.mulf %32, %139 : vector<1x128xf32>
    %149 = vector.shape_cast %148 : vector<1x128xf32> to vector<1x1x128xf32>
    %cst_47 = arith.constant dense<0.000000e+00> : vector<1xf32>
    %150 = vector.multi_reduction <add>, %149, %cst_47 [1, 2] : vector<1x1x128xf32> to vector<1xf32>
    %151 = vector.shape_cast %150 : vector<1xf32> to vector<1x1x1xf32>
    %152 = vector.extract %151[0, 0, 0] : f32 from vector<1x1x1xf32>
    %153 = vector.broadcast %152 : f32 to vector<1x1xf32>
    %cst_48 = arith.constant 5.120000e+02 : f32
    %154 = vector.broadcast %cst_48 : f32 to vector<1x1xf32>
    %155 = arith.divf %153, %154 : vector<1x1xf32>
    %156 = vector.broadcast %147 : vector<1x1xf32> to vector<1x128xf32>
    %157 = arith.mulf %156, %139 : vector<1x128xf32>
    %158 = arith.addf %130, %157 : vector<1x128xf32>
    %159 = arith.mulf %147, %147 : vector<1x1xf32>
    %160 = arith.subf %155, %159 : vector<1x1xf32>
    %161 = vector.broadcast %160 : vector<1x1xf32> to vector<1x128xf32>
    %162 = arith.mulf %161, %139 : vector<1x128xf32>
    %163 = arith.addf %135, %162 : vector<1x128xf32>
    %c4_i32 = arith.constant 4 : i32
    %164 = vector.broadcast %c4_i32 : i32 to vector<1x128xi32>
    %165 = arith.cmpi eq, %49, %164 : vector<1x128xi32>
    %166 = arith.extui %165 : vector<1x128xi1> to vector<1x128xi32>
    %167 = arith.sitofp %166 : vector<1x128xi32> to vector<1x128xf32>
    %168 = arith.mulf %29, %167 : vector<1x128xf32>
    %169 = vector.shape_cast %168 : vector<1x128xf32> to vector<1x1x128xf32>
    %cst_49 = arith.constant dense<0.000000e+00> : vector<1xf32>
    %170 = vector.multi_reduction <add>, %169, %cst_49 [1, 2] : vector<1x1x128xf32> to vector<1xf32>
    %171 = vector.shape_cast %170 : vector<1xf32> to vector<1x1x1xf32>
    %172 = vector.extract %171[0, 0, 0] : f32 from vector<1x1x1xf32>
    %173 = vector.broadcast %172 : f32 to vector<1x1xf32>
    %cst_50 = arith.constant 5.120000e+02 : f32
    %174 = vector.broadcast %cst_50 : f32 to vector<1x1xf32>
    %175 = arith.divf %173, %174 : vector<1x1xf32>
    %176 = arith.mulf %32, %167 : vector<1x128xf32>
    %177 = vector.shape_cast %176 : vector<1x128xf32> to vector<1x1x128xf32>
    %cst_51 = arith.constant dense<0.000000e+00> : vector<1xf32>
    %178 = vector.multi_reduction <add>, %177, %cst_51 [1, 2] : vector<1x1x128xf32> to vector<1xf32>
    %179 = vector.shape_cast %178 : vector<1xf32> to vector<1x1x1xf32>
    %180 = vector.extract %179[0, 0, 0] : f32 from vector<1x1x1xf32>
    %181 = vector.broadcast %180 : f32 to vector<1x1xf32>
    %cst_52 = arith.constant 5.120000e+02 : f32
    %182 = vector.broadcast %cst_52 : f32 to vector<1x1xf32>
    %183 = arith.divf %181, %182 : vector<1x1xf32>
    %184 = vector.broadcast %175 : vector<1x1xf32> to vector<1x128xf32>
    %185 = arith.mulf %184, %167 : vector<1x128xf32>
    %186 = arith.addf %158, %185 : vector<1x128xf32>
    %187 = arith.mulf %175, %175 : vector<1x1xf32>
    %188 = arith.subf %183, %187 : vector<1x1xf32>
    %189 = vector.broadcast %188 : vector<1x1xf32> to vector<1x128xf32>
    %190 = arith.mulf %189, %167 : vector<1x128xf32>
    %191 = arith.addf %163, %190 : vector<1x128xf32>
    %c5_i32 = arith.constant 5 : i32
    %192 = vector.broadcast %c5_i32 : i32 to vector<1x128xi32>
    %193 = arith.cmpi eq, %49, %192 : vector<1x128xi32>
    %194 = arith.extui %193 : vector<1x128xi1> to vector<1x128xi32>
    %195 = arith.sitofp %194 : vector<1x128xi32> to vector<1x128xf32>
    %196 = arith.mulf %29, %195 : vector<1x128xf32>
    %197 = vector.shape_cast %196 : vector<1x128xf32> to vector<1x1x128xf32>
    %cst_53 = arith.constant dense<0.000000e+00> : vector<1xf32>
    %198 = vector.multi_reduction <add>, %197, %cst_53 [1, 2] : vector<1x1x128xf32> to vector<1xf32>
    %199 = vector.shape_cast %198 : vector<1xf32> to vector<1x1x1xf32>
    %200 = vector.extract %199[0, 0, 0] : f32 from vector<1x1x1xf32>
    %201 = vector.broadcast %200 : f32 to vector<1x1xf32>
    %cst_54 = arith.constant 5.120000e+02 : f32
    %202 = vector.broadcast %cst_54 : f32 to vector<1x1xf32>
    %203 = arith.divf %201, %202 : vector<1x1xf32>
    %204 = arith.mulf %32, %195 : vector<1x128xf32>
    %205 = vector.shape_cast %204 : vector<1x128xf32> to vector<1x1x128xf32>
    %cst_55 = arith.constant dense<0.000000e+00> : vector<1xf32>
    %206 = vector.multi_reduction <add>, %205, %cst_55 [1, 2] : vector<1x1x128xf32> to vector<1xf32>
    %207 = vector.shape_cast %206 : vector<1xf32> to vector<1x1x1xf32>
    %208 = vector.extract %207[0, 0, 0] : f32 from vector<1x1x1xf32>
    %209 = vector.broadcast %208 : f32 to vector<1x1xf32>
    %cst_56 = arith.constant 5.120000e+02 : f32
    %210 = vector.broadcast %cst_56 : f32 to vector<1x1xf32>
    %211 = arith.divf %209, %210 : vector<1x1xf32>
    %212 = vector.broadcast %203 : vector<1x1xf32> to vector<1x128xf32>
    %213 = arith.mulf %212, %195 : vector<1x128xf32>
    %214 = arith.addf %186, %213 : vector<1x128xf32>
    %215 = arith.mulf %203, %203 : vector<1x1xf32>
    %216 = arith.subf %211, %215 : vector<1x1xf32>
    %217 = vector.broadcast %216 : vector<1x1xf32> to vector<1x128xf32>
    %218 = arith.mulf %217, %195 : vector<1x128xf32>
    %219 = arith.addf %191, %218 : vector<1x128xf32>
    %c6_i32 = arith.constant 6 : i32
    %220 = vector.broadcast %c6_i32 : i32 to vector<1x128xi32>
    %221 = arith.cmpi eq, %49, %220 : vector<1x128xi32>
    %222 = arith.extui %221 : vector<1x128xi1> to vector<1x128xi32>
    %223 = arith.sitofp %222 : vector<1x128xi32> to vector<1x128xf32>
    %224 = arith.mulf %29, %223 : vector<1x128xf32>
    %225 = vector.shape_cast %224 : vector<1x128xf32> to vector<1x1x128xf32>
    %cst_57 = arith.constant dense<0.000000e+00> : vector<1xf32>
    %226 = vector.multi_reduction <add>, %225, %cst_57 [1, 2] : vector<1x1x128xf32> to vector<1xf32>
    %227 = vector.shape_cast %226 : vector<1xf32> to vector<1x1x1xf32>
    %228 = vector.extract %227[0, 0, 0] : f32 from vector<1x1x1xf32>
    %229 = vector.broadcast %228 : f32 to vector<1x1xf32>
    %cst_58 = arith.constant 5.120000e+02 : f32
    %230 = vector.broadcast %cst_58 : f32 to vector<1x1xf32>
    %231 = arith.divf %229, %230 : vector<1x1xf32>
    %232 = arith.mulf %32, %223 : vector<1x128xf32>
    %233 = vector.shape_cast %232 : vector<1x128xf32> to vector<1x1x128xf32>
    %cst_59 = arith.constant dense<0.000000e+00> : vector<1xf32>
    %234 = vector.multi_reduction <add>, %233, %cst_59 [1, 2] : vector<1x1x128xf32> to vector<1xf32>
    %235 = vector.shape_cast %234 : vector<1xf32> to vector<1x1x1xf32>
    %236 = vector.extract %235[0, 0, 0] : f32 from vector<1x1x1xf32>
    %237 = vector.broadcast %236 : f32 to vector<1x1xf32>
    %cst_60 = arith.constant 5.120000e+02 : f32
    %238 = vector.broadcast %cst_60 : f32 to vector<1x1xf32>
    %239 = arith.divf %237, %238 : vector<1x1xf32>
    %240 = vector.broadcast %231 : vector<1x1xf32> to vector<1x128xf32>
    %241 = arith.mulf %240, %223 : vector<1x128xf32>
    %242 = arith.addf %214, %241 : vector<1x128xf32>
    %243 = arith.mulf %231, %231 : vector<1x1xf32>
    %244 = arith.subf %239, %243 : vector<1x1xf32>
    %245 = vector.broadcast %244 : vector<1x1xf32> to vector<1x128xf32>
    %246 = arith.mulf %245, %223 : vector<1x128xf32>
    %247 = arith.addf %219, %246 : vector<1x128xf32>
    %c7_i32 = arith.constant 7 : i32
    %248 = vector.broadcast %c7_i32 : i32 to vector<1x128xi32>
    %249 = arith.cmpi eq, %49, %248 : vector<1x128xi32>
    %250 = arith.extui %249 : vector<1x128xi1> to vector<1x128xi32>
    %251 = arith.sitofp %250 : vector<1x128xi32> to vector<1x128xf32>
    %252 = arith.mulf %29, %251 : vector<1x128xf32>
    %253 = vector.shape_cast %252 : vector<1x128xf32> to vector<1x1x128xf32>
    %cst_61 = arith.constant dense<0.000000e+00> : vector<1xf32>
    %254 = vector.multi_reduction <add>, %253, %cst_61 [1, 2] : vector<1x1x128xf32> to vector<1xf32>
    %255 = vector.shape_cast %254 : vector<1xf32> to vector<1x1x1xf32>
    %256 = vector.extract %255[0, 0, 0] : f32 from vector<1x1x1xf32>
    %257 = vector.broadcast %256 : f32 to vector<1x1xf32>
    %cst_62 = arith.constant 5.120000e+02 : f32
    %258 = vector.broadcast %cst_62 : f32 to vector<1x1xf32>
    %259 = arith.divf %257, %258 : vector<1x1xf32>
    %260 = arith.mulf %32, %251 : vector<1x128xf32>
    %261 = vector.shape_cast %260 : vector<1x128xf32> to vector<1x1x128xf32>
    %cst_63 = arith.constant dense<0.000000e+00> : vector<1xf32>
    %262 = vector.multi_reduction <add>, %261, %cst_63 [1, 2] : vector<1x1x128xf32> to vector<1xf32>
    %263 = vector.shape_cast %262 : vector<1xf32> to vector<1x1x1xf32>
    %264 = vector.extract %263[0, 0, 0] : f32 from vector<1x1x1xf32>
    %265 = vector.broadcast %264 : f32 to vector<1x1xf32>
    %cst_64 = arith.constant 5.120000e+02 : f32
    %266 = vector.broadcast %cst_64 : f32 to vector<1x1xf32>
    %267 = arith.divf %265, %266 : vector<1x1xf32>
    %268 = vector.broadcast %259 : vector<1x1xf32> to vector<1x128xf32>
    %269 = arith.mulf %268, %251 : vector<1x128xf32>
    %270 = arith.addf %242, %269 : vector<1x128xf32>
    %271 = arith.mulf %259, %259 : vector<1x1xf32>
    %272 = arith.subf %267, %271 : vector<1x1xf32>
    %273 = vector.broadcast %272 : vector<1x1xf32> to vector<1x128xf32>
    %274 = arith.mulf %273, %251 : vector<1x128xf32>
    %275 = arith.addf %247, %274 : vector<1x128xf32>
    %276 = vector.broadcast %270 : vector<1x128xf32> to vector<32x128xf32>
    %277 = arith.subf %27, %276 : vector<32x128xf32>
    %cst_65 = arith.constant 9.99999974E-6 : f32
    %278 = vector.broadcast %cst_65 : f32 to vector<1x128xf32>
    %279 = arith.addf %275, %278 : vector<1x128xf32>
    %280 = math.rsqrt %279 : vector<1x128xf32>
    %281 = vector.broadcast %280 : vector<1x128xf32> to vector<32x128xf32>
    %282 = arith.mulf %277, %281 : vector<32x128xf32>
    %cst_66 = arith.constant 0.000000e+00 : f32
    %283 = vector.broadcast %cst_66 : f32 to vector<32x128xf32>
    %284 = arith.maximumf %282, %283 : vector<32x128xf32>
    %c0_67 = arith.constant 0 : index
    %c0_68 = arith.constant 0 : index
    %c0_69 = arith.constant 0 : index
    %285 = vector.load %arg0[%c0_67, %c0_68, %c0_69] : memref<2x16x128xf32, #tpu.memory_space<vmem>>, vector<2x16x128xf32>
    %286 = vector.shape_cast %285 : vector<2x16x128xf32> to vector<32x128xf32>
    %c0_70 = arith.constant 0 : index
    %c0_71 = arith.constant 0 : index
    %287 = vector.load %arg4[%c0_70, %c0_71] : memref<32x16xbf16, #tpu.memory_space<vmem>>, vector<32x16xbf16>
    %288 = arith.truncf %284 : vector<32x128xf32> to vector<32x128xbf16>
    %c0_72 = arith.constant 0 : index
    %c0_73 = arith.constant 0 : index
    %289 = vector.load %arg2[%c0_72, %c0_73] : memref<128x128xbf16, #tpu.memory_space<vmem>>, vector<128x128xbf16>
    %cst_74 = arith.constant dense<0.000000e+00> : vector<32x128xf32>
    %290 = tpu.matmul %288, %289, %cst_74 {dimension_numbers = #tpu.dot_dimension_numbers<[1], [0], [0], [1], [0, 0, 1, 1], [], []>} : vector<32x128xbf16>, vector<128x128xbf16>, vector<32x128xf32> -> vector<32x128xf32>
    %291 = arith.truncf %290 : vector<32x128xf32> to vector<32x128xbf16>
    %292 = vector.extract_strided_slice %291 {offsets = [0, 0], sizes = [16, 128], strides = [1, 1]} : vector<32x128xbf16> to vector<16x128xbf16>
    %cst_75 = arith.constant dense<0.000000e+00> : vector<32x128xf32>
    %293 = tpu.matmul %287, %292, %cst_75 {dimension_numbers = #tpu.dot_dimension_numbers<[1], [0], [0], [1], [0, 0, 1, 1], [], []>} : vector<32x16xbf16>, vector<16x128xbf16>, vector<32x128xf32> -> vector<32x128xf32>
    %294 = vector.extract_strided_slice %291 {offsets = [16, 0], sizes = [16, 128], strides = [1, 1]} : vector<32x128xbf16> to vector<16x128xbf16>
    %cst_76 = arith.constant dense<0.000000e+00> : vector<32x128xf32>
    %295 = tpu.matmul %287, %294, %cst_76 {dimension_numbers = #tpu.dot_dimension_numbers<[1], [0], [0], [1], [0, 0, 1, 1], [], []>} : vector<32x16xbf16>, vector<16x128xbf16>, vector<32x128xf32> -> vector<32x128xf32>
    %296 = tpu.concatenate %293, %295 in 0 : vector<32x128xf32>, vector<32x128xf32> -> vector<64x128xf32>
    %297 = arith.truncf %286 : vector<32x128xf32> to vector<32x128xbf16>
    %c0_77 = arith.constant 0 : index
    %c0_78 = arith.constant 0 : index
    %298 = vector.load %arg3[%c0_77, %c0_78] : memref<128x128xbf16, #tpu.memory_space<vmem>>, vector<128x128xbf16>
    %cst_79 = arith.constant dense<0.000000e+00> : vector<32x128xf32>
    %299 = tpu.matmul %297, %298, %cst_79 {dimension_numbers = #tpu.dot_dimension_numbers<[1], [0], [0], [1], [0, 0, 1, 1], [], []>} : vector<32x128xbf16>, vector<128x128xbf16>, vector<32x128xf32> -> vector<32x128xf32>
    %300 = arith.truncf %299 : vector<32x128xf32> to vector<32x128xbf16>
    %301 = vector.extract_strided_slice %300 {offsets = [0, 0], sizes = [16, 128], strides = [1, 1]} : vector<32x128xbf16> to vector<16x128xbf16>
    %cst_80 = arith.constant dense<0.000000e+00> : vector<32x128xf32>
    %302 = tpu.matmul %287, %301, %cst_80 {dimension_numbers = #tpu.dot_dimension_numbers<[1], [0], [0], [1], [0, 0, 1, 1], [], []>} : vector<32x16xbf16>, vector<16x128xbf16>, vector<32x128xf32> -> vector<32x128xf32>
    %303 = vector.extract_strided_slice %300 {offsets = [16, 0], sizes = [16, 128], strides = [1, 1]} : vector<32x128xbf16> to vector<16x128xbf16>
    %cst_81 = arith.constant dense<0.000000e+00> : vector<32x128xf32>
    %304 = tpu.matmul %287, %303, %cst_81 {dimension_numbers = #tpu.dot_dimension_numbers<[1], [0], [0], [1], [0, 0, 1, 1], [], []>} : vector<32x16xbf16>, vector<16x128xbf16>, vector<32x128xf32> -> vector<32x128xf32>
    %305 = tpu.concatenate %302, %304 in 0 : vector<32x128xf32>, vector<32x128xf32> -> vector<64x128xf32>
    %cst_82 = arith.constant dense<0.000000e+00> : vector<128xf32>
    %306 = vector.multi_reduction <add>, %296, %cst_82 [0] : vector<64x128xf32> to vector<128xf32>
    %307 = vector.shape_cast %306 : vector<128xf32> to vector<1x128xf32>
    %308 = arith.mulf %296, %296 : vector<64x128xf32>
    %cst_83 = arith.constant dense<0.000000e+00> : vector<128xf32>
    %309 = vector.multi_reduction <add>, %308, %cst_83 [0] : vector<64x128xf32> to vector<128xf32>
    %310 = vector.shape_cast %309 : vector<128xf32> to vector<1x128xf32>
    %311 = tpu.iota {dimensions = array<i32: 1>} : vector<1x128xi32>
    %c4_i32_84 = arith.constant 4 : i32
    %c0_i32_85 = arith.constant 0 : i32
    %312 = arith.cmpi eq, %c4_i32_84, %c0_i32_85 : i32
    %c1_i32_86 = arith.constant 1 : i32
    %313 = arith.select %312, %c1_i32_86, %c4_i32_84 : i32
    %314 = vector.broadcast %313 : i32 to vector<1x128xi32>
    %315 = arith.remsi %311, %314 : vector<1x128xi32>
    %c0_i32_87 = arith.constant 0 : i32
    %316 = vector.broadcast %c0_i32_87 : i32 to vector<1x128xi32>
    %317 = arith.cmpi ne, %315, %316 : vector<1x128xi32>
    %c0_i32_88 = arith.constant 0 : i32
    %318 = vector.broadcast %c0_i32_88 : i32 to vector<1x128xi32>
    %319 = arith.cmpi slt, %315, %318 : vector<1x128xi32>
    %c0_i32_89 = arith.constant 0 : i32
    %320 = arith.cmpi slt, %313, %c0_i32_89 : i32
    %321 = vector.broadcast %320 : i1 to vector<1x128xi1>
    %322 = vector.broadcast %321 : vector<1x128xi1> to vector<1x128xi1>
    %323 = arith.xori %319, %322 : vector<1x128xi1>
    %324 = arith.andi %323, %317 : vector<1x128xi1>
    %325 = vector.broadcast %313 : i32 to vector<1x128xi32>
    %326 = arith.addi %315, %325 : vector<1x128xi32>
    %327 = arith.select %324, %326, %315 : vector<1x128xi1>, vector<1x128xi32>
    %cst_90 = arith.constant 0.000000e+00 : f32
    %328 = vector.broadcast %cst_90 : f32 to vector<1x128xf32>
    %cst_91 = arith.constant 0.000000e+00 : f32
    %329 = vector.broadcast %cst_91 : f32 to vector<1x128xf32>
    %c0_i32_92 = arith.constant 0 : i32
    %330 = vector.broadcast %c0_i32_92 : i32 to vector<1x128xi32>
    %331 = arith.cmpi eq, %327, %330 : vector<1x128xi32>
    %332 = arith.extui %331 : vector<1x128xi1> to vector<1x128xi32>
    %333 = arith.sitofp %332 : vector<1x128xi32> to vector<1x128xf32>
    %334 = arith.mulf %307, %333 : vector<1x128xf32>
    %335 = vector.shape_cast %334 : vector<1x128xf32> to vector<1x1x128xf32>
    %cst_93 = arith.constant dense<0.000000e+00> : vector<1xf32>
    %336 = vector.multi_reduction <add>, %335, %cst_93 [1, 2] : vector<1x1x128xf32> to vector<1xf32>
    %337 = vector.shape_cast %336 : vector<1xf32> to vector<1x1x1xf32>
    %338 = vector.extract %337[0, 0, 0] : f32 from vector<1x1x1xf32>
    %339 = vector.broadcast %338 : f32 to vector<1x1xf32>
    %cst_94 = arith.constant 2.048000e+03 : f32
    %340 = vector.broadcast %cst_94 : f32 to vector<1x1xf32>
    %341 = arith.divf %339, %340 : vector<1x1xf32>
    %342 = arith.mulf %310, %333 : vector<1x128xf32>
    %343 = vector.shape_cast %342 : vector<1x128xf32> to vector<1x1x128xf32>
    %cst_95 = arith.constant dense<0.000000e+00> : vector<1xf32>
    %344 = vector.multi_reduction <add>, %343, %cst_95 [1, 2] : vector<1x1x128xf32> to vector<1xf32>
    %345 = vector.shape_cast %344 : vector<1xf32> to vector<1x1x1xf32>
    %346 = vector.extract %345[0, 0, 0] : f32 from vector<1x1x1xf32>
    %347 = vector.broadcast %346 : f32 to vector<1x1xf32>
    %cst_96 = arith.constant 2.048000e+03 : f32
    %348 = vector.broadcast %cst_96 : f32 to vector<1x1xf32>
    %349 = arith.divf %347, %348 : vector<1x1xf32>
    %350 = vector.broadcast %341 : vector<1x1xf32> to vector<1x128xf32>
    %351 = arith.mulf %350, %333 : vector<1x128xf32>
    %352 = arith.addf %328, %351 : vector<1x128xf32>
    %353 = arith.mulf %341, %341 : vector<1x1xf32>
    %354 = arith.subf %349, %353 : vector<1x1xf32>
    %355 = vector.broadcast %354 : vector<1x1xf32> to vector<1x128xf32>
    %356 = arith.mulf %355, %333 : vector<1x128xf32>
    %357 = arith.addf %329, %356 : vector<1x128xf32>
    %c1_i32_97 = arith.constant 1 : i32
    %358 = vector.broadcast %c1_i32_97 : i32 to vector<1x128xi32>
    %359 = arith.cmpi eq, %327, %358 : vector<1x128xi32>
    %360 = arith.extui %359 : vector<1x128xi1> to vector<1x128xi32>
    %361 = arith.sitofp %360 : vector<1x128xi32> to vector<1x128xf32>
    %362 = arith.mulf %307, %361 : vector<1x128xf32>
    %363 = vector.shape_cast %362 : vector<1x128xf32> to vector<1x1x128xf32>
    %cst_98 = arith.constant dense<0.000000e+00> : vector<1xf32>
    %364 = vector.multi_reduction <add>, %363, %cst_98 [1, 2] : vector<1x1x128xf32> to vector<1xf32>
    %365 = vector.shape_cast %364 : vector<1xf32> to vector<1x1x1xf32>
    %366 = vector.extract %365[0, 0, 0] : f32 from vector<1x1x1xf32>
    %367 = vector.broadcast %366 : f32 to vector<1x1xf32>
    %cst_99 = arith.constant 2.048000e+03 : f32
    %368 = vector.broadcast %cst_99 : f32 to vector<1x1xf32>
    %369 = arith.divf %367, %368 : vector<1x1xf32>
    %370 = arith.mulf %310, %361 : vector<1x128xf32>
    %371 = vector.shape_cast %370 : vector<1x128xf32> to vector<1x1x128xf32>
    %cst_100 = arith.constant dense<0.000000e+00> : vector<1xf32>
    %372 = vector.multi_reduction <add>, %371, %cst_100 [1, 2] : vector<1x1x128xf32> to vector<1xf32>
    %373 = vector.shape_cast %372 : vector<1xf32> to vector<1x1x1xf32>
    %374 = vector.extract %373[0, 0, 0] : f32 from vector<1x1x1xf32>
    %375 = vector.broadcast %374 : f32 to vector<1x1xf32>
    %cst_101 = arith.constant 2.048000e+03 : f32
    %376 = vector.broadcast %cst_101 : f32 to vector<1x1xf32>
    %377 = arith.divf %375, %376 : vector<1x1xf32>
    %378 = vector.broadcast %369 : vector<1x1xf32> to vector<1x128xf32>
    %379 = arith.mulf %378, %361 : vector<1x128xf32>
    %380 = arith.addf %352, %379 : vector<1x128xf32>
    %381 = arith.mulf %369, %369 : vector<1x1xf32>
    %382 = arith.subf %377, %381 : vector<1x1xf32>
    %383 = vector.broadcast %382 : vector<1x1xf32> to vector<1x128xf32>
    %384 = arith.mulf %383, %361 : vector<1x128xf32>
    %385 = arith.addf %357, %384 : vector<1x128xf32>
    %c2_i32_102 = arith.constant 2 : i32
    %386 = vector.broadcast %c2_i32_102 : i32 to vector<1x128xi32>
    %387 = arith.cmpi eq, %327, %386 : vector<1x128xi32>
    %388 = arith.extui %387 : vector<1x128xi1> to vector<1x128xi32>
    %389 = arith.sitofp %388 : vector<1x128xi32> to vector<1x128xf32>
    %390 = arith.mulf %307, %389 : vector<1x128xf32>
    %391 = vector.shape_cast %390 : vector<1x128xf32> to vector<1x1x128xf32>
    %cst_103 = arith.constant dense<0.000000e+00> : vector<1xf32>
    %392 = vector.multi_reduction <add>, %391, %cst_103 [1, 2] : vector<1x1x128xf32> to vector<1xf32>
    %393 = vector.shape_cast %392 : vector<1xf32> to vector<1x1x1xf32>
    %394 = vector.extract %393[0, 0, 0] : f32 from vector<1x1x1xf32>
    %395 = vector.broadcast %394 : f32 to vector<1x1xf32>
    %cst_104 = arith.constant 2.048000e+03 : f32
    %396 = vector.broadcast %cst_104 : f32 to vector<1x1xf32>
    %397 = arith.divf %395, %396 : vector<1x1xf32>
    %398 = arith.mulf %310, %389 : vector<1x128xf32>
    %399 = vector.shape_cast %398 : vector<1x128xf32> to vector<1x1x128xf32>
    %cst_105 = arith.constant dense<0.000000e+00> : vector<1xf32>
    %400 = vector.multi_reduction <add>, %399, %cst_105 [1, 2] : vector<1x1x128xf32> to vector<1xf32>
    %401 = vector.shape_cast %400 : vector<1xf32> to vector<1x1x1xf32>
    %402 = vector.extract %401[0, 0, 0] : f32 from vector<1x1x1xf32>
    %403 = vector.broadcast %402 : f32 to vector<1x1xf32>
    %cst_106 = arith.constant 2.048000e+03 : f32
    %404 = vector.broadcast %cst_106 : f32 to vector<1x1xf32>
    %405 = arith.divf %403, %404 : vector<1x1xf32>
    %406 = vector.broadcast %397 : vector<1x1xf32> to vector<1x128xf32>
    %407 = arith.mulf %406, %389 : vector<1x128xf32>
    %408 = arith.addf %380, %407 : vector<1x128xf32>
    %409 = arith.mulf %397, %397 : vector<1x1xf32>
    %410 = arith.subf %405, %409 : vector<1x1xf32>
    %411 = vector.broadcast %410 : vector<1x1xf32> to vector<1x128xf32>
    %412 = arith.mulf %411, %389 : vector<1x128xf32>
    %413 = arith.addf %385, %412 : vector<1x128xf32>
    %c3_i32_107 = arith.constant 3 : i32
    %414 = vector.broadcast %c3_i32_107 : i32 to vector<1x128xi32>
    %415 = arith.cmpi eq, %327, %414 : vector<1x128xi32>
    %416 = arith.extui %415 : vector<1x128xi1> to vector<1x128xi32>
    %417 = arith.sitofp %416 : vector<1x128xi32> to vector<1x128xf32>
    %418 = arith.mulf %307, %417 : vector<1x128xf32>
    %419 = vector.shape_cast %418 : vector<1x128xf32> to vector<1x1x128xf32>
    %cst_108 = arith.constant dense<0.000000e+00> : vector<1xf32>
    %420 = vector.multi_reduction <add>, %419, %cst_108 [1, 2] : vector<1x1x128xf32> to vector<1xf32>
    %421 = vector.shape_cast %420 : vector<1xf32> to vector<1x1x1xf32>
    %422 = vector.extract %421[0, 0, 0] : f32 from vector<1x1x1xf32>
    %423 = vector.broadcast %422 : f32 to vector<1x1xf32>
    %cst_109 = arith.constant 2.048000e+03 : f32
    %424 = vector.broadcast %cst_109 : f32 to vector<1x1xf32>
    %425 = arith.divf %423, %424 : vector<1x1xf32>
    %426 = arith.mulf %310, %417 : vector<1x128xf32>
    %427 = vector.shape_cast %426 : vector<1x128xf32> to vector<1x1x128xf32>
    %cst_110 = arith.constant dense<0.000000e+00> : vector<1xf32>
    %428 = vector.multi_reduction <add>, %427, %cst_110 [1, 2] : vector<1x1x128xf32> to vector<1xf32>
    %429 = vector.shape_cast %428 : vector<1xf32> to vector<1x1x1xf32>
    %430 = vector.extract %429[0, 0, 0] : f32 from vector<1x1x1xf32>
    %431 = vector.broadcast %430 : f32 to vector<1x1xf32>
    %cst_111 = arith.constant 2.048000e+03 : f32
    %432 = vector.broadcast %cst_111 : f32 to vector<1x1xf32>
    %433 = arith.divf %431, %432 : vector<1x1xf32>
    %434 = vector.broadcast %425 : vector<1x1xf32> to vector<1x128xf32>
    %435 = arith.mulf %434, %417 : vector<1x128xf32>
    %436 = arith.addf %408, %435 : vector<1x128xf32>
    %437 = arith.mulf %425, %425 : vector<1x1xf32>
    %438 = arith.subf %433, %437 : vector<1x1xf32>
    %439 = vector.broadcast %438 : vector<1x1xf32> to vector<1x128xf32>
    %440 = arith.mulf %439, %417 : vector<1x128xf32>
    %441 = arith.addf %413, %440 : vector<1x128xf32>
    %442 = vector.broadcast %436 : vector<1x128xf32> to vector<64x128xf32>
    %443 = arith.subf %296, %442 : vector<64x128xf32>
    %cst_112 = arith.constant 9.99999974E-6 : f32
    %444 = vector.broadcast %cst_112 : f32 to vector<1x128xf32>
    %445 = arith.addf %441, %444 : vector<1x128xf32>
    %446 = math.rsqrt %445 : vector<1x128xf32>
    %447 = vector.broadcast %446 : vector<1x128xf32> to vector<64x128xf32>
    %448 = arith.mulf %443, %447 : vector<64x128xf32>
    %cst_113 = arith.constant dense<0.000000e+00> : vector<128xf32>
    %449 = vector.multi_reduction <add>, %305, %cst_113 [0] : vector<64x128xf32> to vector<128xf32>
    %450 = vector.shape_cast %449 : vector<128xf32> to vector<1x128xf32>
    %451 = arith.mulf %305, %305 : vector<64x128xf32>
    %cst_114 = arith.constant dense<0.000000e+00> : vector<128xf32>
    %452 = vector.multi_reduction <add>, %451, %cst_114 [0] : vector<64x128xf32> to vector<128xf32>
    %453 = vector.shape_cast %452 : vector<128xf32> to vector<1x128xf32>
    %454 = tpu.iota {dimensions = array<i32: 1>} : vector<1x128xi32>
    %c4_i32_115 = arith.constant 4 : i32
    %c0_i32_116 = arith.constant 0 : i32
    %455 = arith.cmpi eq, %c4_i32_115, %c0_i32_116 : i32
    %c1_i32_117 = arith.constant 1 : i32
    %456 = arith.select %455, %c1_i32_117, %c4_i32_115 : i32
    %457 = vector.broadcast %456 : i32 to vector<1x128xi32>
    %458 = arith.remsi %454, %457 : vector<1x128xi32>
    %c0_i32_118 = arith.constant 0 : i32
    %459 = vector.broadcast %c0_i32_118 : i32 to vector<1x128xi32>
    %460 = arith.cmpi ne, %458, %459 : vector<1x128xi32>
    %c0_i32_119 = arith.constant 0 : i32
    %461 = vector.broadcast %c0_i32_119 : i32 to vector<1x128xi32>
    %462 = arith.cmpi slt, %458, %461 : vector<1x128xi32>
    %c0_i32_120 = arith.constant 0 : i32
    %463 = arith.cmpi slt, %456, %c0_i32_120 : i32
    %464 = vector.broadcast %463 : i1 to vector<1x128xi1>
    %465 = vector.broadcast %464 : vector<1x128xi1> to vector<1x128xi1>
    %466 = arith.xori %462, %465 : vector<1x128xi1>
    %467 = arith.andi %466, %460 : vector<1x128xi1>
    %468 = vector.broadcast %456 : i32 to vector<1x128xi32>
    %469 = arith.addi %458, %468 : vector<1x128xi32>
    %470 = arith.select %467, %469, %458 : vector<1x128xi1>, vector<1x128xi32>
    %cst_121 = arith.constant 0.000000e+00 : f32
    %471 = vector.broadcast %cst_121 : f32 to vector<1x128xf32>
    %cst_122 = arith.constant 0.000000e+00 : f32
    %472 = vector.broadcast %cst_122 : f32 to vector<1x128xf32>
    %c0_i32_123 = arith.constant 0 : i32
    %473 = vector.broadcast %c0_i32_123 : i32 to vector<1x128xi32>
    %474 = arith.cmpi eq, %470, %473 : vector<1x128xi32>
    %475 = arith.extui %474 : vector<1x128xi1> to vector<1x128xi32>
    %476 = arith.sitofp %475 : vector<1x128xi32> to vector<1x128xf32>
    %477 = arith.mulf %450, %476 : vector<1x128xf32>
    %478 = vector.shape_cast %477 : vector<1x128xf32> to vector<1x1x128xf32>
    %cst_124 = arith.constant dense<0.000000e+00> : vector<1xf32>
    %479 = vector.multi_reduction <add>, %478, %cst_124 [1, 2] : vector<1x1x128xf32> to vector<1xf32>
    %480 = vector.shape_cast %479 : vector<1xf32> to vector<1x1x1xf32>
    %481 = vector.extract %480[0, 0, 0] : f32 from vector<1x1x1xf32>
    %482 = vector.broadcast %481 : f32 to vector<1x1xf32>
    %cst_125 = arith.constant 2.048000e+03 : f32
    %483 = vector.broadcast %cst_125 : f32 to vector<1x1xf32>
    %484 = arith.divf %482, %483 : vector<1x1xf32>
    %485 = arith.mulf %453, %476 : vector<1x128xf32>
    %486 = vector.shape_cast %485 : vector<1x128xf32> to vector<1x1x128xf32>
    %cst_126 = arith.constant dense<0.000000e+00> : vector<1xf32>
    %487 = vector.multi_reduction <add>, %486, %cst_126 [1, 2] : vector<1x1x128xf32> to vector<1xf32>
    %488 = vector.shape_cast %487 : vector<1xf32> to vector<1x1x1xf32>
    %489 = vector.extract %488[0, 0, 0] : f32 from vector<1x1x1xf32>
    %490 = vector.broadcast %489 : f32 to vector<1x1xf32>
    %cst_127 = arith.constant 2.048000e+03 : f32
    %491 = vector.broadcast %cst_127 : f32 to vector<1x1xf32>
    %492 = arith.divf %490, %491 : vector<1x1xf32>
    %493 = vector.broadcast %484 : vector<1x1xf32> to vector<1x128xf32>
    %494 = arith.mulf %493, %476 : vector<1x128xf32>
    %495 = arith.addf %471, %494 : vector<1x128xf32>
    %496 = arith.mulf %484, %484 : vector<1x1xf32>
    %497 = arith.subf %492, %496 : vector<1x1xf32>
    %498 = vector.broadcast %497 : vector<1x1xf32> to vector<1x128xf32>
    %499 = arith.mulf %498, %476 : vector<1x128xf32>
    %500 = arith.addf %472, %499 : vector<1x128xf32>
    %c1_i32_128 = arith.constant 1 : i32
    %501 = vector.broadcast %c1_i32_128 : i32 to vector<1x128xi32>
    %502 = arith.cmpi eq, %470, %501 : vector<1x128xi32>
    %503 = arith.extui %502 : vector<1x128xi1> to vector<1x128xi32>
    %504 = arith.sitofp %503 : vector<1x128xi32> to vector<1x128xf32>
    %505 = arith.mulf %450, %504 : vector<1x128xf32>
    %506 = vector.shape_cast %505 : vector<1x128xf32> to vector<1x1x128xf32>
    %cst_129 = arith.constant dense<0.000000e+00> : vector<1xf32>
    %507 = vector.multi_reduction <add>, %506, %cst_129 [1, 2] : vector<1x1x128xf32> to vector<1xf32>
    %508 = vector.shape_cast %507 : vector<1xf32> to vector<1x1x1xf32>
    %509 = vector.extract %508[0, 0, 0] : f32 from vector<1x1x1xf32>
    %510 = vector.broadcast %509 : f32 to vector<1x1xf32>
    %cst_130 = arith.constant 2.048000e+03 : f32
    %511 = vector.broadcast %cst_130 : f32 to vector<1x1xf32>
    %512 = arith.divf %510, %511 : vector<1x1xf32>
    %513 = arith.mulf %453, %504 : vector<1x128xf32>
    %514 = vector.shape_cast %513 : vector<1x128xf32> to vector<1x1x128xf32>
    %cst_131 = arith.constant dense<0.000000e+00> : vector<1xf32>
    %515 = vector.multi_reduction <add>, %514, %cst_131 [1, 2] : vector<1x1x128xf32> to vector<1xf32>
    %516 = vector.shape_cast %515 : vector<1xf32> to vector<1x1x1xf32>
    %517 = vector.extract %516[0, 0, 0] : f32 from vector<1x1x1xf32>
    %518 = vector.broadcast %517 : f32 to vector<1x1xf32>
    %cst_132 = arith.constant 2.048000e+03 : f32
    %519 = vector.broadcast %cst_132 : f32 to vector<1x1xf32>
    %520 = arith.divf %518, %519 : vector<1x1xf32>
    %521 = vector.broadcast %512 : vector<1x1xf32> to vector<1x128xf32>
    %522 = arith.mulf %521, %504 : vector<1x128xf32>
    %523 = arith.addf %495, %522 : vector<1x128xf32>
    %524 = arith.mulf %512, %512 : vector<1x1xf32>
    %525 = arith.subf %520, %524 : vector<1x1xf32>
    %526 = vector.broadcast %525 : vector<1x1xf32> to vector<1x128xf32>
    %527 = arith.mulf %526, %504 : vector<1x128xf32>
    %528 = arith.addf %500, %527 : vector<1x128xf32>
    %c2_i32_133 = arith.constant 2 : i32
    %529 = vector.broadcast %c2_i32_133 : i32 to vector<1x128xi32>
    %530 = arith.cmpi eq, %470, %529 : vector<1x128xi32>
    %531 = arith.extui %530 : vector<1x128xi1> to vector<1x128xi32>
    %532 = arith.sitofp %531 : vector<1x128xi32> to vector<1x128xf32>
    %533 = arith.mulf %450, %532 : vector<1x128xf32>
    %534 = vector.shape_cast %533 : vector<1x128xf32> to vector<1x1x128xf32>
    %cst_134 = arith.constant dense<0.000000e+00> : vector<1xf32>
    %535 = vector.multi_reduction <add>, %534, %cst_134 [1, 2] : vector<1x1x128xf32> to vector<1xf32>
    %536 = vector.shape_cast %535 : vector<1xf32> to vector<1x1x1xf32>
    %537 = vector.extract %536[0, 0, 0] : f32 from vector<1x1x1xf32>
    %538 = vector.broadcast %537 : f32 to vector<1x1xf32>
    %cst_135 = arith.constant 2.048000e+03 : f32
    %539 = vector.broadcast %cst_135 : f32 to vector<1x1xf32>
    %540 = arith.divf %538, %539 : vector<1x1xf32>
    %541 = arith.mulf %453, %532 : vector<1x128xf32>
    %542 = vector.shape_cast %541 : vector<1x128xf32> to vector<1x1x128xf32>
    %cst_136 = arith.constant dense<0.000000e+00> : vector<1xf32>
    %543 = vector.multi_reduction <add>, %542, %cst_136 [1, 2] : vector<1x1x128xf32> to vector<1xf32>
    %544 = vector.shape_cast %543 : vector<1xf32> to vector<1x1x1xf32>
    %545 = vector.extract %544[0, 0, 0] : f32 from vector<1x1x1xf32>
    %546 = vector.broadcast %545 : f32 to vector<1x1xf32>
    %cst_137 = arith.constant 2.048000e+03 : f32
    %547 = vector.broadcast %cst_137 : f32 to vector<1x1xf32>
    %548 = arith.divf %546, %547 : vector<1x1xf32>
    %549 = vector.broadcast %540 : vector<1x1xf32> to vector<1x128xf32>
    %550 = arith.mulf %549, %532 : vector<1x128xf32>
    %551 = arith.addf %523, %550 : vector<1x128xf32>
    %552 = arith.mulf %540, %540 : vector<1x1xf32>
    %553 = arith.subf %548, %552 : vector<1x1xf32>
    %554 = vector.broadcast %553 : vector<1x1xf32> to vector<1x128xf32>
    %555 = arith.mulf %554, %532 : vector<1x128xf32>
    %556 = arith.addf %528, %555 : vector<1x128xf32>
    %c3_i32_138 = arith.constant 3 : i32
    %557 = vector.broadcast %c3_i32_138 : i32 to vector<1x128xi32>
    %558 = arith.cmpi eq, %470, %557 : vector<1x128xi32>
    %559 = arith.extui %558 : vector<1x128xi1> to vector<1x128xi32>
    %560 = arith.sitofp %559 : vector<1x128xi32> to vector<1x128xf32>
    %561 = arith.mulf %450, %560 : vector<1x128xf32>
    %562 = vector.shape_cast %561 : vector<1x128xf32> to vector<1x1x128xf32>
    %cst_139 = arith.constant dense<0.000000e+00> : vector<1xf32>
    %563 = vector.multi_reduction <add>, %562, %cst_139 [1, 2] : vector<1x1x128xf32> to vector<1xf32>
    %564 = vector.shape_cast %563 : vector<1xf32> to vector<1x1x1xf32>
    %565 = vector.extract %564[0, 0, 0] : f32 from vector<1x1x1xf32>
    %566 = vector.broadcast %565 : f32 to vector<1x1xf32>
    %cst_140 = arith.constant 2.048000e+03 : f32
    %567 = vector.broadcast %cst_140 : f32 to vector<1x1xf32>
    %568 = arith.divf %566, %567 : vector<1x1xf32>
    %569 = arith.mulf %453, %560 : vector<1x128xf32>
    %570 = vector.shape_cast %569 : vector<1x128xf32> to vector<1x1x128xf32>
    %cst_141 = arith.constant dense<0.000000e+00> : vector<1xf32>
    %571 = vector.multi_reduction <add>, %570, %cst_141 [1, 2] : vector<1x1x128xf32> to vector<1xf32>
    %572 = vector.shape_cast %571 : vector<1xf32> to vector<1x1x1xf32>
    %573 = vector.extract %572[0, 0, 0] : f32 from vector<1x1x1xf32>
    %574 = vector.broadcast %573 : f32 to vector<1x1xf32>
    %cst_142 = arith.constant 2.048000e+03 : f32
    %575 = vector.broadcast %cst_142 : f32 to vector<1x1xf32>
    %576 = arith.divf %574, %575 : vector<1x1xf32>
    %577 = vector.broadcast %568 : vector<1x1xf32> to vector<1x128xf32>
    %578 = arith.mulf %577, %560 : vector<1x128xf32>
    %579 = arith.addf %551, %578 : vector<1x128xf32>
    %580 = arith.mulf %568, %568 : vector<1x1xf32>
    %581 = arith.subf %576, %580 : vector<1x1xf32>
    %582 = vector.broadcast %581 : vector<1x1xf32> to vector<1x128xf32>
    %583 = arith.mulf %582, %560 : vector<1x128xf32>
    %584 = arith.addf %556, %583 : vector<1x128xf32>
    %585 = vector.broadcast %579 : vector<1x128xf32> to vector<64x128xf32>
    %586 = arith.subf %305, %585 : vector<64x128xf32>
    %cst_143 = arith.constant 9.99999974E-6 : f32
    %587 = vector.broadcast %cst_143 : f32 to vector<1x128xf32>
    %588 = arith.addf %584, %587 : vector<1x128xf32>
    %589 = math.rsqrt %588 : vector<1x128xf32>
    %590 = vector.broadcast %589 : vector<1x128xf32> to vector<64x128xf32>
    %591 = arith.mulf %586, %590 : vector<64x128xf32>
    %592 = arith.addf %448, %591 : vector<64x128xf32>
    %cst_144 = arith.constant 0.000000e+00 : f32
    %593 = vector.broadcast %cst_144 : f32 to vector<64x128xf32>
    %594 = arith.maximumf %592, %593 : vector<64x128xf32>
    %c0_145 = arith.constant 0 : index
    %c0_146 = arith.constant 0 : index
    %595 = vector.load %arg5[%c0_145, %c0_146] : memref<64x128xf32, #tpu.memory_space<vmem>>, vector<64x128xf32>
    tpu.vector_store %arg5[%c0_145, %c0_146], %594 {strides = array<i32>} : memref<64x128xf32, #tpu.memory_space<vmem>>, vector<64x128xf32>,
    return
  }
}

</mosaic_0001>

<bundles_post_ra>
// kernel: up_res_block.1
= control target key start
LH: loop header
LB: loop body
LE: loop exit
PB: predicated region body
PF: predicated region fallthrough
CT: control target
= control target key end

     0   :  { %v1763_v3 = vmov 0.0   ;;  %vm63_vm0 = vcmask 1046528   ;;  %vm231_vm1 = vcmask 1045504   ;;  %vm376_vm5 = vcmask 1040384   ;;  %s2336_s1 = inlined_call_operand.vmem [shape: bf16[3,128,128], index: 1, kind: input, shape index: {}]   ;;  %s2337_s0 = inlined_call_operand.vmem [shape: f32[2,16,128], index: 0, kind: input, shape index: {}]   ;;  %s2338_s3 = inlined_call_operand.vmem [shape: bf16[128,128], index: 3, kind: input, shape index: {}]   ;;  %s2339_s2 = inlined_call_operand.vmem [shape: bf16[128,128], index: 2, kind: input, shape index: {}]   ;;  %s2340_s4 = inlined_call_operand.vmem [shape: bf16[32,16], index: 4, kind: input, shape index: {}]   ;;  %s2341_s5 = inlined_call_operand.vmem [shape: f32[64,128], index: 5, kind: output, shape index: {}]  }
   0x1   :  { %v1658_v0 = vld [vmem:[%s2336_s1 + $0x78] sm:$0xff]  ;;  %21 = vst [vmem:[#allocation2] sm:$0x1] %v1763_v3  ;;  %v1657_v4 = vld [vmem:[%s2336_s1 + $0x70] sm:$0xff]  ;;  %v1656_v7 = vld [vmem:[%s2336_s1 + $0x68] sm:$0xff]  ;;  %vm796_vm15 = vcmask 130048  }
   0x2   :  { %v1650_v1 = vld [vmem:[%s2336_s1 + $0x38] sm:$0xff]  ;;  %23 = vst [vmem:[#allocation2 + $0x11] sm:$0x1] %v1763_v3  ;;  %145 = vmatpush.bf16.msra.mxu0 %v1658_v0  ;;  %v1649_v5 = vld [vmem:[%s2336_s1 + $0x30] sm:$0xff]  ;;  %v1648_v8 = vld [vmem:[%s2336_s1 + $0x28] sm:$0xff] }
   0x3   :  { %v1666_v2 = vld [vmem:[%s2336_s1 + $0xb8] sm:$0xff]  ;;  %212 = vmatpush.bf16.msra.mxu1 %v1650_v1  ;;  %22 = vst [vmem:[#allocation2 + $0x18] sm:$0x1] %v1763_v3  ;;  %v1665_v6 = vld [vmem:[%s2336_s1 + $0xb0] sm:$0xff]  ;;  %v1664_v9 = vld [vmem:[%s2336_s1 + $0xa8] sm:$0xff] }
   0x4   :  { %313 = vmatpush.bf16.msra.mxu2 %v1666_v2  ;;  %24 = vst [vmem:[#allocation2 + $0x29] sm:$0x1] %v1763_v3  ;;  %v1830_v10 = vld [vmem:[%s2337_s0] sm:$0xff]  ;;  %v1835_v11 = vld [vmem:[%s2337_s0 + $0x8] sm:$0xff]  ;;  %v1840_v12 = vld [vmem:[%s2337_s0 + $0x10] sm:$0xff] }
   0x5   :  { %29 = vst [vmem:[#allocation2 + $0x1] sm:$0xff] %v1830_v10  ;;  %v1846_v13 = vld [vmem:[%s2337_s0 + $0x18] sm:$0xff]  ;;  %v1655_v14 = vld [vmem:[%s2336_s1 + $0x60] sm:$0xff]  ;;  %v1653_v20 = vld [vmem:[%s2336_s1 + $0x50] sm:$0xff] }
   0x6   :  { %146 = vmatpush.bf16.msra.mxu0 %v1657_v4  ;;  %v1647_v15 = vld [vmem:[%s2336_s1 + $0x20] sm:$0xff]  ;;  %30 = vst [vmem:[#allocation2 + $0x9] sm:$0xff] %v1835_v11  ;;  %v1654_v17 = vld [vmem:[%s2336_s1 + $0x58] sm:$0xff]  ;;  %v1645_v21 = vld [vmem:[%s2336_s1 + $0x10] sm:$0xff] }
   0x7   :  { %213 = vmatpush.bf16.msra.mxu1 %v1649_v5  ;;  %v1663_v16 = vld [vmem:[%s2336_s1 + $0xa0] sm:$0xff]  ;;  %31 = vst [vmem:[#allocation2 + $0x19] sm:$0xff] %v1840_v12  ;;  %v1646_v18 = vld [vmem:[%s2336_s1 + $0x18] sm:$0xff]  ;;  %v1661_v22 = vld [vmem:[%s2336_s1 + $0x90] sm:$0xff] }
   0x8   :  { %314 = vmatpush.bf16.msra.mxu2 %v1665_v6  ;;  %32 = vst [vmem:[#allocation2 + $0x21] sm:$0xff] %v1846_v13  ;;  %v1662_v19 = vld [vmem:[%s2336_s1 + $0x98] sm:$0xff]  ;;  %v1652_v26 = vld [vmem:[%s2336_s1 + $0x48] sm:$0xff]  ;;  %v1651_v35 = vld [vmem:[%s2336_s1 + $0x40] sm:$0xff] }
   0x9   :  { %v1644_v27 = vld [vmem:[%s2336_s1 + $0x8] sm:$0xff]  ;;  %v1643_v36 = vld [vmem:[%s2336_s1] sm:$0xff] }
   0xa   :  { %147 = vmatpush.bf16.msra.mxu0 %v1656_v7  ;;  %v1660_v31 = vld [vmem:[%s2336_s1 + $0x88] sm:$0xff]  ;;  %v1659_v39 = vld [vmem:[%s2336_s1 + $0x80] sm:$0xff] }
   0xb   :  { %214 = vmatpush.bf16.msra.mxu1 %v1648_v8 }
   0xc   :  { %315 = vmatpush.bf16.msra.mxu2 %v1664_v9  ;;  %v33_v23 = vld [vmem:[#allocation2] sm:$0xff] }
   0xd   :  { %v34_v24 = vld [vmem:[#allocation2 + $0x8] sm:$0xff]  ;;  %v35_v25 = vld [vmem:[#allocation2 + $0x10] sm:$0x3]  ;;  %v64_v28 = vrot.slane %v33_v23, 1  ;;  %v232_v32 = vrot.slane %v33_v23, 2 }
   0xe   :  { %148 = vmatpush.bf16.msra.mxu0 %v1655_v14  ;;  %v65_v29 = vrot.slane %v34_v24, 1  ;;  %v67_v30 = vrot.slane %v35_v25, 1  ;;  %v233_v33 = vrot.slane %v34_v24, 2  ;;  %v235_v34 = vrot.slane %v35_v25, 2  ;;  %v36_v45 = vld [vmem:[#allocation2 + $0x18] sm:$0xff] }
   0xf   :  { %215 = vmatpush.bf16.msra.mxu1 %v1647_v15  ;;  %v39_v43 = vpack.c.bf16 %v34_v24, %v33_v23  ;;  %v37_v46 = vld [vmem:[#allocation2 + $0x20] sm:$0xff]  ;;  %v38_v47 = vld [vmem:[#allocation2 + $0x28] sm:$0x3]  ;;  %v69_v48 = vrot.slane %v36_v45, 1  ;;  %v237_v51 = vrot.slane %v36_v45, 2 }
  0x10   :  { %316 = vmatpush.bf16.msra.mxu2 %v1663_v16  ;;  %v66_v37 = vsel %vm63_vm0, %v64_v28, %v65_v29  ;;  %v68_v38 = vsel %vm63_vm0, %v65_v29, %v67_v30  ;;  %v234_v40 = vsel %vm231_vm1, %v232_v32, %v233_v33  ;;  %v236_v41 = vsel %vm231_vm1, %v233_v33, %v235_v34 }
  0x11   :  { %v78_v42 = vpack.c.bf16 %v68_v38, %v66_v37  ;;  %v246_v44 = vpack.c.bf16 %v236_v41, %v234_v40  ;;  %v70_v49 = vrot.slane %v37_v46, 1  ;;  %v72_v50 = vrot.slane %v38_v47, 1 }
  0x12   :  { %149 = vmatpush.bf16.msra.mxu0 %v1654_v17  ;;  %v238_v52 = vrot.slane %v37_v46, 2  ;;  %v240_v53 = vrot.slane %v38_v47, 2  ;;  %v40_v59 = vpack.c.bf16 %v37_v46, %v36_v45 }
  0x13   :  { %216 = vmatpush.bf16.msra.mxu1 %v1646_v18  ;;  %v71_v54 = vsel %vm63_vm0, %v69_v48, %v70_v49  ;;  %v73_v55 = vsel %vm63_vm0, %v70_v49, %v72_v50 }
  0x14   :  { %317 = vmatpush.bf16.msra.mxu2 %v1662_v19  ;;  %v239_v56 = vsel %vm231_vm1, %v237_v51, %v238_v52  ;;  %v241_v57 = vsel %vm231_vm1, %v238_v52, %v240_v53  ;;  %v79_v58 = vpack.c.bf16 %v73_v55, %v71_v54 }
  0x15   :  { %v247_v60 = vpack.c.bf16 %v241_v57, %v239_v56 }
  0x16   :  { %150 = vmatpush.bf16.msra.mxu0 %v1653_v20  ;;  %v358_v20 = vlaneseq }
  0x17   :  { %217 = vmatpush.bf16.msra.mxu1 %v1645_v21 }
  0x18   :  { %318 = vmatpush.bf16.msra.mxu2 %v1661_v22  ;;  %v1921_v29 = vand.u32 127, %v358_v20 }
  0x1a   :  { %151 = vmatpush.bf16.msra.mxu0 %v1652_v26 }
  0x1b   :  { %218 = vmatpush.bf16.msra.mxu1 %v1644_v27 }
  0x1c   :  { %319 = vmatpush.bf16.msra.mxu2 %v1660_v31 }
  0x1e   :  { %152 = vmatpush.bf16.msra.mxu0 %v1651_v35  ;;  %v1927_v35 = vand.u32 7, %v1921_v29 }
  0x1f   :  { %219 = vmatpush.bf16.msra.mxu1 %v1643_v36 }
  0x20   :  { %320 = vmatpush.bf16.msra.mxu2 %v1659_v39  ;;  %vm450_vm2 = vcmp.eq.s32.totalorder %v1927_v35, 2  ;;  %vm415_vm3 = vcmp.eq.s32.totalorder %v1927_v35, 1  ;;  %vm372_vm4 = vcmp.eq.s32.totalorder %v1927_v35, 0  ;;  %vm520_vm6 = vcmp.eq.s32.totalorder %v1927_v35, 4 }
  0x21   :  { %153 = vmatmul.bf16.vlgmr.msra.gmra.mxu0 %v78_v42  ;;  %v1933_v42 = vsel %vm450_vm2, 1.0, %v1763_v3  ;;  %vm555_vm7 = vcmp.eq.s32.totalorder %v1927_v35, 5  ;;  %vm485_vm8 = vcmp.eq.s32.totalorder %v1927_v35, 3  ;;  %v1951_v54 = vsel %vm520_vm6, 1.0, %v1763_v3 }
  0x22   :  { %220 = vmatmul.bf16.vlgmr.msra.gmra.mxu1 %v39_v43  ;;  %v1936_v43 = vsel %vm415_vm3, 1.0, %v1763_v3  ;;  %v1954_v55 = vsel %vm555_vm7, 1.0, %v1763_v3  ;;  %v1957_v56 = vsel %vm485_vm8, 1.0, %v1763_v3  ;;  %vm590_vm9 = vcmp.eq.s32.totalorder %v1927_v35, 6 }
  0x23   :  { %321 = vmatmul.bf16.vlgmr.msra.gmra.mxu2 %v246_v44  ;;  %v1939_v44 = vsel %vm372_vm4, 1.0, %v1763_v3  ;;  %vm625_vm10 = vcmp.eq.s32.totalorder %v1927_v35, 7 }
  0x31   :  { %158 = vmatmul.bf16.gmra.mxu0 %v79_v58 }
  0x32   :  { %225 = vmatmul.bf16.gmra.mxu1 %v40_v59 }
  0x33   :  { %326 = vmatmul.bf16.gmra.mxu2 %v247_v60 }
  0x9e   :  { %v154_v61 = vpop.f32.mrf.mxu0 }
  0x9f   :  { %v221_v62 = vpop.f32.mrf.mxu1 }
  0xa0   :  { %v222_v6 = vadd.f32 %v221_v62, %v154_v61 }
  0xa6   :  { %v322_v63 = vpop.f32.mrf.mxu2  ;;  %v156_v0 = vpop.f32.mrf.mxu0 }
  0xa7   :  { %v223_v1 = vpop.f32.mrf.mxu1  ;;  %v1906_v15 = vadd.f32 %v322_v63, %v222_v6 }
  0xa8   :  { %v224_v7 = vadd.f32 %v223_v1, %v156_v0  ;;  %v1967_v1 = vsel %vm590_vm9, 1.0, %v1763_v3 }
  0xa9   :  { %v345_v21 = vmul.f32 %v1906_v15, %v1906_v15 }
  0xae   :  { %v324_v2 = vpop.f32.mrf.mxu2  ;;  %v159_v4 = vpop.f32.mrf.mxu0 }
  0xaf   :  { %v226_v5 = vpop.f32.mrf.mxu1  ;;  %v1904_v14 = vadd.f32 %v324_v2, %v224_v7 }
  0xb0   :  { %v227_v8 = vadd.f32 %v226_v5, %v159_v4 }
  0xb1   :  { %v346_v19 = vmul.f32 %v1904_v14, %v1904_v14  ;;  %v336_v22 = vadd.f32 %v1904_v14, %v1906_v15 }
  0xb3   :  { %v349_v26 = vadd.f32 %v346_v19, %v345_v21 }
  0xb6   :  { %v327_v9 = vpop.f32.mrf.mxu2  ;;  %v161_v17 = vpop.f32.mrf.mxu0 }
  0xb7   :  { %v1908_v16 = vadd.f32 %v327_v9, %v227_v8  ;;  %v228_v18 = vpop.f32.mrf.mxu1 }
  0xb8   :  { %v229_v24 = vadd.f32 %v228_v18, %v161_v17 }
  0xb9   :  { %v347_v23 = vmul.f32 %v1908_v16, %v1908_v16  ;;  %v337_v27 = vadd.f32 %v336_v22, %v1908_v16  ;;  %v1983_v22 = vsel %vm625_vm10, 1.0, %v1763_v3 }
  0xbb   :  { %v350_v30 = vadd.f32 %v349_v26, %v347_v23 }
  0xbe   :  { %v329_v25 = vpop.f32.mrf.mxu2 }
  0xbf   :  { %v1919_v28 = vadd.f32 %v329_v25, %v229_v24 }
  0xc1   :  { %v338_v31 = vadd.f32 %v337_v27, %v1919_v28  ;;  %v348_v32 = vmul.f32 %v1919_v28, %v1919_v28 }
  0xc3   :  { %v339_v33 = vrot.slane %v338_v31, 4  ;;  %v351_v34 = vadd.f32 %v350_v30, %v348_v32 }
  0xc5   :  { %v340_v36 = vadd.f32 %v339_v33, %v338_v31  ;;  %v352_v37 = vrot.slane %v351_v34, 4 }
  0xc7   :  { %v341_v38 = vrot.slane %v340_v36, 2  ;;  %v353_v40 = vadd.f32 %v352_v37, %v351_v34 }
  0xc9   :  { %v342_v39 = vadd.f32 %v341_v38, %v340_v36  ;;  %v354_v46 = vrot.slane %v353_v40, 2 }
  0xcb   :  { %v343_v41 = vrot.slane %v342_v39, 1  ;;  %v355_v50 = vadd.f32 %v354_v46, %v353_v40 }
  0xcd   :  { %v344_v45 = vadd.f32 %v343_v41, %v342_v39  ;;  %v356_v57 = vrot.slane %v355_v50, 1 }
  0xcf   :  { %v453_v47 = vmul.f32 %v1933_v42, %v344_v45  ;;  %v418_v48 = vmul.f32 %v1936_v43, %v344_v45  ;;  %v375_v49 = vmul.f32 %v1939_v44, %v344_v45  ;;  %v523_v58 = vmul.f32 %v1951_v54, %v344_v45 }
  0xd0   :  { %v558_v59 = vmul.f32 %v1954_v55, %v344_v45  ;;  %v488_v60 = vmul.f32 %v1957_v56, %v344_v45  ;;  %v357_v61 = vadd.f32 %v356_v57, %v355_v50  ;;  %v593_v5 = vmul.f32 %v1967_v1, %v344_v45 }
  0xd1   :  { %v454_v51 = vsel %vm376_vm5, %v453_v47, 0.0  ;;  %v419_v52 = vsel %vm376_vm5, %v418_v48, 0.0  ;;  %v377_v53 = vsel %vm376_vm5, %v375_v49, 0.0  ;;  %v524_v62 = vsel %vm376_vm5, %v523_v58, 0.0 }
  0xd2   :  { %455 = vadd.xlane.f32.xlu2 %v454_v51  ;;  %420 = vadd.xlane.f32.xlu1 %v419_v52  ;;  %v559_v63 = vsel %vm376_vm5, %v558_v59, 0.0  ;;  %v489_v0 = vsel %vm376_vm5, %v488_v60, 0.0  ;;  %v466_v2 = vmul.f32 %v1933_v42, %v357_v61  ;;  %v431_v4 = vmul.f32 %v1936_v43, %v357_v61 }
  0xd3   :  { %378 = vadd.xlane.f32.xlu0 %v377_v53  ;;  %v594_v8 = vsel %vm376_vm5, %v593_v5, 0.0  ;;  %v571_v9 = vmul.f32 %v1954_v55, %v357_v61  ;;  %v501_v17 = vmul.f32 %v1957_v56, %v357_v61  ;;  %v396_v18 = vmul.f32 %v1939_v44, %v357_v61 }
  0xd4   :  { %v467_v6 = vsel %vm376_vm5, %v466_v2, 0.0  ;;  %v432_v7 = vsel %vm376_vm5, %v431_v4, 0.0  ;;  %v628_v23 = vmul.f32 %v1983_v22, %v344_v45  ;;  %v606_v24 = vmul.f32 %v1967_v1, %v357_v61 }
  0xd5   :  { %v572_v19 = vsel %vm376_vm5, %v571_v9, 0.0  ;;  %v502_v20 = vsel %vm376_vm5, %v501_v17, 0.0  ;;  %v397_v21 = vsel %vm376_vm5, %v396_v18, 0.0  ;;  %v536_v25 = vmul.f32 %v1951_v54, %v357_v61 }
  0xd6   :  { %v629_v26 = vsel %vm376_vm5, %v628_v23, 0.0  ;;  %v607_v27 = vsel %vm376_vm5, %v606_v24, 0.0  ;;  %v641_v31 = vmul.f32 %v1983_v22, %v357_v61 }
  0xd7   :  { %v537_v30 = vsel %vm376_vm5, %v536_v25, 0.0 }
  0xd8   :  { %v642_v32 = vsel %vm376_vm5, %v641_v31, 0.0 }
  0xda   :  { %525 = vadd.xlane.f32.xlu2 %v524_v62  ;;  %560 = vadd.xlane.f32.xlu1 %v559_v63 }
  0xdb   :  { %490 = vadd.xlane.f32.xlu0 %v489_v0 }
  0xe2   :  { %468 = vadd.xlane.f32.xlu2 %v467_v6  ;;  %433 = vadd.xlane.f32.xlu1 %v432_v7 }
  0xe3   :  { %595 = vadd.xlane.f32.xlu0 %v594_v8 }
  0xea   :  { %573 = vadd.xlane.f32.xlu2 %v572_v19  ;;  %503 = vadd.xlane.f32.xlu1 %v502_v20 }
  0xeb   :  { %398 = vadd.xlane.f32.xlu0 %v397_v21 }
  0xf2   :  { %630 = vadd.xlane.f32.xlu2 %v629_v26  ;;  %608 = vadd.xlane.f32.xlu1 %v607_v27 }
  0xf3   :  { %538 = vadd.xlane.f32.xlu0 %v537_v30 }
  0xfb   :  { %643 = vadd.xlane.f32.xlu0 %v642_v32 }
 0x145   :  { %v456_v33 = vpop.xlane.xlu2 %455  ;;  %v421_v34 = vpop.xlane.xlu1 %420 }
 0x146   :  { %v379_v35 = vpop.xlane.xlu0 %378  ;;  %v422_v47 = vrot.slane %v421_v34, 4  ;;  %v457_v49 = vrot.slane %v456_v33, 4 }
 0x147   :  { %v380_v36 = vrot.slane %v379_v35, 4 }
 0x148   :  { %v423_v50 = vadd.f32 %v422_v47, %v421_v34  ;;  %v458_v58 = vadd.f32 %v457_v49, %v456_v33 }
 0x149   :  { %v381_v37 = vadd.f32 %v380_v36, %v379_v35 }
 0x14a   :  { %v424_v59 = vrot.slane %v423_v50, 2  ;;  %v459_v63 = vrot.slane %v458_v58, 2 }
 0x14b   :  { %v382_v38 = vrot.slane %v381_v37, 2 }
 0x14c   :  { %v425_v6 = vadd.f32 %v424_v59, %v423_v50  ;;  %v460_v25 = vadd.f32 %v459_v63, %v458_v58 }
 0x14d   :  { %v526_v39 = vpop.xlane.xlu2 %525  ;;  %v561_v40 = vpop.xlane.xlu1 %560  ;;  %v383_v41 = vadd.f32 %v382_v38, %v381_v37 }
 0x14e   :  { %v491_v45 = vpop.xlane.xlu0 %490  ;;  %v527_v0 = vrot.slane %v526_v39, 4  ;;  %v562_v7 = vrot.slane %v561_v40, 4  ;;  %v426_v30 = vrot.slane %v425_v6, 1 }
 0x14f   :  { %v384_v46 = vrot.slane %v383_v41, 1  ;;  %v492_v61 = vrot.slane %v491_v45, 4 }
 0x150   :  { %v528_v21 = vadd.f32 %v527_v0, %v526_v39  ;;  %v563_v31 = vadd.f32 %v562_v7, %v561_v40 }
 0x151   :  { %v385_v48 = vadd.f32 %v384_v46, %v383_v41  ;;  %v493_v8 = vadd.f32 %v492_v61, %v491_v45  ;;  %v461_v41 = vrot.slane %v460_v25, 1 }
 0x152   :  { %v529_v37 = vrot.slane %v528_v21, 2  ;;  %v564_v50 = vrot.slane %v563_v31, 2 }
 0x153   :  { %1686 = vpush %v385_v48  ;;  %v494_v32 = vrot.slane %v493_v8, 2  ;;  %v427_v48 = vadd.f32 %v426_v30, %v425_v6 }
 0x155   :  { %v469_v51 = vpop.xlane.xlu2 %468  ;;  %v434_v52 = vpop.xlane.xlu1 %433  ;;  %v495_v58 = vadd.f32 %v494_v32, %v493_v8  ;;  %v462_v8 = vadd.f32 %v461_v41, %v460_v25 }
 0x156   :  { %v596_v53 = vpop.xlane.xlu0 %595  ;;  %v435_v57 = vrot.slane %v434_v52, 4  ;;  %v470_v60 = vrot.slane %v469_v51, 4 }
 0x157   :  { %v597_v23 = vrot.slane %v596_v53, 4 }
 0x158   :  { %v436_v62 = vadd.f32 %v435_v57, %v434_v52  ;;  %v471_v2 = vadd.f32 %v470_v60, %v469_v51 }
 0x159   :  { %v598_v38 = vadd.f32 %v597_v23, %v596_v53  ;;  %v530_v53 = vadd.f32 %v529_v37, %v528_v21 }
 0x15a   :  { %v437_v18 = vrot.slane %v436_v62, 2  ;;  %v472_v26 = vrot.slane %v471_v2, 2 }
 0x15b   :  { %v599_v63 = vrot.slane %v598_v38, 2 }
 0x15c   :  { %v438_v36 = vadd.f32 %v437_v18, %v436_v62  ;;  %v473_v39 = vadd.f32 %v472_v26, %v471_v2  ;;  %v565_v18 = vadd.f32 %v564_v50, %v563_v31 }
 0x15d   :  { %v574_v4 = vpop.xlane.xlu2 %573  ;;  %v504_v5 = vpop.xlane.xlu1 %503  ;;  %v600_v26 = vadd.f32 %v599_v63, %v598_v38 }
 0x15e   :  { %v505_v9 = vrot.slane %v504_v5, 4  ;;  %v399_v17 = vpop.xlane.xlu0 %398  ;;  %v575_v19 = vrot.slane %v574_v4, 4  ;;  %v439_v61 = vrot.slane %v438_v36, 1  ;;  %v474_v7 = vrot.slane %v473_v39, 1 }
 0x15f   :  { %v400_v20 = vrot.slane %v399_v17, 4 }
 0x160   :  { %v506_v24 = vadd.f32 %v505_v9, %v504_v5  ;;  %v576_v34 = vadd.f32 %v575_v19, %v574_v4  ;;  %v475_v21 = vadd.f32 %v474_v7, %v473_v39 }
 0x161   :  { %v401_v27 = vadd.f32 %v400_v20, %v399_v17  ;;  %v496_v17 = vrot.slane %v495_v58, 1  ;;  %v440_v20 = vadd.f32 %v439_v61, %v438_v36 }
 0x162   :  { %v507_v33 = vrot.slane %v506_v24, 2  ;;  %v577_v40 = vrot.slane %v576_v34, 2 }
 0x163   :  { %v402_v35 = vrot.slane %v401_v27, 2 }
 0x164   :  { %v508_v49 = vadd.f32 %v507_v33, %v506_v24  ;;  %v578_v23 = vadd.f32 %v577_v40, %v576_v34  ;;  %v531_v24 = vrot.slane %v530_v53, 1  ;;  %v601_v34 = vrot.slane %v600_v26, 1 }
 0x165   :  { %v631_v45 = vpop.xlane.xlu2 %630  ;;  %v609_v46 = vpop.xlane.xlu1 %608  ;;  %v403_v47 = vadd.f32 %v402_v35, %v401_v27  ;;  %v497_v35 = vadd.f32 %v496_v17, %v495_v58  ;;  %v1675_v17 = vld [vmem:[%s2339_s2 + $0x30] sm:$0xff] }
 0x166   :  { %v632_v51 = vrot.slane %v631_v45, 4  ;;  %v610_v52 = vrot.slane %v609_v46, 4  ;;  %v539_v57 = vpop.xlane.xlu0 %538  ;;  %v509_v9 = vrot.slane %v508_v49, 1  ;;  %v532_v25 = vadd.f32 %v531_v24, %v530_v53 }
 0x167   :  { %v540_v59 = vrot.slane %v539_v57, 4  ;;  %v404_v60 = vrot.slane %v403_v47, 1 }
 0x168   :  { %v633_v62 = vadd.f32 %v632_v51, %v631_v45  ;;  %v611_v0 = vadd.f32 %v610_v52, %v609_v46  ;;  %v510_v32 = vadd.f32 %v509_v9, %v508_v49  ;;  %v566_v45 = vrot.slane %v565_v18, 1  ;;  %v1676_v9 = vld [vmem:[%s2339_s2 + $0x38] sm:$0xff] }
 0x169   :  { %v541_v4 = vadd.f32 %v540_v59, %v539_v57  ;;  %v405_v5 = vadd.f32 %v404_v60, %v403_v47  ;;  %v579_v47 = vrot.slane %v578_v23, 1  ;;  %v602_v52 = vadd.f32 %v601_v34, %v600_v26  ;;  %757 = vmatpush.bf16.msra.mxu3 %v1676_v9 }
 0x16a   :  { %v634_v6 = vrot.slane %v633_v62, 2  ;;  %v612_v2 = vrot.slane %v611_v0, 2  ;;  %v567_v39 = vadd.f32 %v566_v45, %v565_v18  ;;  %v1764_v60 = vmov 512.0   ;;  %v1682_v18 = vld [vmem:[%s2338_s3 + $0x28] sm:$0xff] }
 0x16b   :  { %v542_v19 = vrot.slane %v541_v4, 2  ;;  %1688 = vpush %v405_v5  ;;  %v580_v50 = vadd.f32 %v579_v47, %v578_v23  ;;  %1753 = vrcp.f32 %v1764_v60 }
 0x16c   :  { %1690 = vpush %v427_v48  ;;  %v613_v27 = vadd.f32 %v612_v2, %v611_v0  ;;  %v635_v30 = vadd.f32 %v634_v6, %v633_v62  ;;  %v1683_v6 = vld [vmem:[%s2338_s3 + $0x30] sm:$0xff] }
 0x16d   :  { %1692 = vpush %v440_v20  ;;  %v543_v33 = vadd.f32 %v542_v19, %v541_v4  ;;  %v1684_v4 = vld [vmem:[%s2338_s3 + $0x38] sm:$0xff]  ;;  %758 = vmatpush.bf16.msra.mxu3 %v1675_v17  ;;  %v1671_v17 = vld [vmem:[%s2339_s2 + $0x10] sm:$0xff] }
 0x16e   :  { %1694 = vpush %v462_v8  ;;  %v644_v37 = vpop.xlane.xlu0 %643  ;;  %v614_v36 = vrot.slane %v613_v27, 1  ;;  %v636_v41 = vrot.slane %v635_v30, 1  ;;  %913 = vmatpush.bf16.msrb.mxu2 %v1684_v4 }
 0x16f   :  { %1696 = vpush %v475_v21  ;;  %v645_v31 = vrot.slane %v644_v37, 4  ;;  %v544_v46 = vrot.slane %v543_v33, 1 }
 0x170   :  { %1698 = vpush %v497_v35  ;;  %v615_v51 = vadd.f32 %v614_v36, %v613_v27  ;;  %v637_v57 = vadd.f32 %v636_v41, %v635_v30  ;;  %v1674_v27 = vld [vmem:[%s2339_s2 + $0x28] sm:$0xff]  ;;  %v1681_v30 = vld [vmem:[%s2338_s3 + $0x20] sm:$0xff] }
 0x171   :  { %1700 = vpush %v510_v32  ;;  %v646_v38 = vadd.f32 %v645_v31, %v644_v37  ;;  %v545_v48 = vadd.f32 %v544_v46, %v543_v33  ;;  %v1754_v61 = vpop.eup %1753  ;;  %759 = vmatpush.bf16.msra.mxu3 %v1674_v27 }
 0x172   :  { %1702 = vpush %v532_v25  ;;  %v389_v63 = vmul.f32 512.0, %v1754_v61  ;;  %vm393_vm11 = vweird.f32 %v1754_v61  ;;  %914 = vmatpush.bf16.msrb.mxu2 %v1683_v6  ;;  %v1673_v25 = vld [vmem:[%s2339_s2 + $0x20] sm:$0xff] }
 0x173   :  { %v647_v49 = vrot.slane %v646_v38, 2  ;;  %1704 = vpush %v545_v48  ;;  %v1680_v48 = vld [vmem:[%s2338_s3 + $0x18] sm:$0xff] }
 0x174   :  { %1706 = vpush %v567_v39  ;;  %v390_v62 = vsub.f32 1.0, %v389_v63 }
 0x175   :  { %1708 = vpush %v580_v50  ;;  %v648_v58 = vadd.f32 %v647_v49, %v646_v38  ;;  %760 = vmatpush.bf16.msra.mxu3 %v1673_v25 }
 0x176   :  { %1710 = vpush %v602_v52  ;;  %v391_v0 = vmul.f32 %v1754_v61, %v390_v62  ;;  %915 = vmatpush.bf16.msrb.mxu2 %v1682_v18 }
 0x177   :  { %1712 = vpush %v615_v51  ;;  %v649_v40 = vrot.slane %v648_v58, 1  ;;  %v1672_v51 = vld [vmem:[%s2339_s2 + $0x18] sm:$0xff] }
 0x178   :  { %1714 = vpush %v637_v57  ;;  %v392_v53 = vadd.f32 %v1754_v61, %v391_v0 }
 0x179   :  { %v650_v59 = vadd.f32 %v649_v40, %v648_v58  ;;  %761 = vmatpush.bf16.msra.mxu3 %v1672_v51 }
 0x17a   :  { %v1996_v7 = vsel %vm393_vm11, %v1754_v61, %v392_v53  ;;  %916 = vmatpush.bf16.msrb.mxu2 %v1681_v30  ;;  %v1678_v30 = vld [vmem:[%s2338_s3 + $0x8] sm:$0xff] }
 0x17b   :  { %1716 = vpush %v650_v59  ;;  %v1679_v59 = vld [vmem:[%s2338_s3 + $0x10] sm:$0xff] }
 0x17d   :  { %762 = vmatpush.bf16.msra.mxu3 %v1671_v17 }
 0x17e   :  { %917 = vmatpush.bf16.msrb.mxu2 %v1680_v48 }
 0x182   :  { %918 = vmatpush.bf16.msrb.mxu2 %v1679_v59 }
 0x184   :  { %s1687_s24 = spop %1686 }
 0x185   :  { %v387_v5 = vstv %s1687_s24 }
 0x186   :  { %v2005_v2 = vmul.f32 %v1996_v7, %v387_v5  ;;  %919 = vmatpush.bf16.msrb.mxu2 %v1678_v30 }
 0x188   :  { %v411_v20 = vmul.f32 %v2005_v2, %v2005_v2 }
 0x19c   :  { %s1689_s7 = spop %1688 }
 0x19d   :  { %v407_v19 = vstv %s1689_s7  ;;  %s1691_s8 = spop %1690 }
 0x19e   :  { %v408_v8 = vmul.f32 %v407_v19, %v1996_v7  ;;  %v429_v23 = vstv %s1691_s8  ;;  %s1693_s9 = spop %1692 }
 0x19f   :  { %v430_v24 = vmul.f32 %v429_v23, %v1996_v7  ;;  %v442_v26 = vstv %s1693_s9  ;;  %s1695_s10 = spop %1694 }
 0x1a0   :  { %v412_v21 = vsub.f32 %v408_v8, %v411_v20  ;;  %v464_v32 = vstv %s1695_s10  ;;  %s1697_s15 = spop %1696  ;;  %v443_v35 = vmul.f32 %v442_v26, %v1996_v7 }
 0x1a1   :  { %v446_v33 = vmul.f32 %v430_v24, %v430_v24  ;;  %v2025_v37 = vmul.f32 %v464_v32, %v1996_v7  ;;  %v477_v45 = vstv %s1697_s15  ;;  %s1699_s16 = spop %1698  ;;  %v444_v18 = vmul.f32 %v1936_v43, %v430_v24 }
 0x1a2   :  { %v499_v31 = vstv %s1699_s16  ;;  %s1701_s17 = spop %1700  ;;  %v478_v36 = vmul.f32 %v477_v45, %v1996_v7  ;;  %v413_v39 = vmul.f32 %v1939_v44, %v412_v21  ;;  %v409_v21 = vmul.f32 %v1939_v44, %v2005_v2 }
 0x1a3   :  { %v447_v46 = vsub.f32 %v443_v35, %v446_v33  ;;  %v481_v47 = vmul.f32 %v2025_v37, %v2025_v37  ;;  %s1703_s18 = spop %1702  ;;  %v2034_v34 = vmul.f32 %v499_v31, %v1996_v7  ;;  %v512_v41 = vstv %s1701_s17  ;;  %v1670_v31 = vld [vmem:[%s2339_s2 + $0x8] sm:$0xff] }
 0x1a4   :  { %v534_v38 = vstv %s1703_s18  ;;  %s1705_s21 = spop %1704  ;;  %v513_v57 = vmul.f32 %v512_v41, %v1996_v7  ;;  %v479_v48 = vmul.f32 %v1933_v42, %v2025_v37  ;;  %763 = vmatpush.bf16.msra.mxu3 %v1670_v31 }
 0x1a5   :  { %v448_v49 = vmul.f32 %v1936_v43, %v447_v46  ;;  %v482_v50 = vsub.f32 %v478_v36, %v481_v47  ;;  %s1707_s23 = spop %1706  ;;  %v516_v52 = vmul.f32 %v2034_v34, %v2034_v34  ;;  %v2048_v58 = vmul.f32 %v534_v38, %v1996_v7  ;;  %v1677_v38 = vld [vmem:[%s2338_s3] sm:$0xff] }
 0x1a6   :  { %v547_v40 = vstv %s1705_s21  ;;  %s1709_s25 = spop %1708  ;;  %v569_v62 = vstv %s1707_s23  ;;  %v445_v46 = vadd.f32 %v444_v18, %v409_v21  ;;  %920 = vmatpush.bf16.msrb.mxu2 %v1677_v38 }
 0x1a7   :  { %v449_v60 = vadd.f32 %v448_v49, %v413_v39  ;;  %v483_v61 = vmul.f32 %v1933_v42, %v482_v50  ;;  %v548_v63 = vmul.f32 %v547_v40, %v1996_v7  ;;  %s1711_s28 = spop %1710  ;;  %v517_v0 = vsub.f32 %v513_v57, %v516_v52  ;;  %v1669_v50 = vld [vmem:[%s2339_s2] sm:$0xff] }
 0x1a8   :  { %v551_v53 = vmul.f32 %v2048_v58, %v2048_v58  ;;  %s1713_s29 = spop %1712  ;;  %v570_v5 = vmul.f32 %v569_v62, %v1996_v7  ;;  %v582_v9 = vstv %s1709_s25  ;;  %v604_v6 = vstv %s1711_s28  ;;  %764 = vmatpush.bf16.msra.mxu3 %v1669_v50 }
 0x1a9   :  { %v484_v4 = vadd.f32 %v483_v61, %v449_v60  ;;  %s1715_s30 = spop %1714  ;;  %v518_v19 = vmul.f32 %v1957_v56, %v517_v0  ;;  %v583_v23 = vmul.f32 %v582_v9, %v1996_v7  ;;  %v605_v26 = vmul.f32 %v604_v6, %v1996_v7 }
 0x1aa   :  { %v552_v20 = vsub.f32 %v548_v63, %v551_v53  ;;  %v586_v8 = vmul.f32 %v570_v5, %v570_v5  ;;  %v617_v27 = vstv %s1713_s29  ;;  %v639_v24 = vstv %s1715_s30 }
 0x1ab   :  { %v519_v32 = vadd.f32 %v518_v19, %v484_v4  ;;  %v621_v35 = vmul.f32 %v605_v26, %v605_v26  ;;  %v618_v45 = vmul.f32 %v617_v27, %v1996_v7  ;;  %v640_v36 = vmul.f32 %v639_v24, %v1996_v7 }
 0x1ac   :  { %v553_v43 = vmul.f32 %v1951_v54, %v552_v20  ;;  %s1717_s10 = spop %1716  ;;  %v587_v33 = vsub.f32 %v583_v23, %v586_v8  ;;  %v480_v51 = vadd.f32 %v479_v48, %v445_v46  ;;  %v514_v40 = vmul.f32 %v1957_v56, %v2034_v34 }
 0x1ad   :  { %v652_v25 = vstv %s1717_s10  ;;  %v622_v2 = vsub.f32 %v618_v45, %v621_v35  ;;  %v656_v39 = vmul.f32 %v640_v36, %v640_v36  ;;  %v549_v61 = vmul.f32 %v1951_v54, %v2048_v58 }
 0x1ae   :  { %v554_v47 = vadd.f32 %v553_v43, %v519_v32  ;;  %v588_v44 = vmul.f32 %v1954_v55, %v587_v33  ;;  %v653_v41 = vmul.f32 %v652_v25, %v1996_v7  ;;  %v847_v7 = vpack.c.bf16 %v1835_v11, %v1830_v10 }
 0x1af   :  { %v623_v52 = vmul.f32 %v1967_v1, %v622_v2  ;;  %v515_v37 = vadd.f32 %v514_v40, %v480_v51  ;;  %v584_v0 = vmul.f32 %v1954_v55, %v570_v5  ;;  %v619_v11 = vmul.f32 %v1967_v1, %v605_v26 }
 0x1b0   :  { %v589_v49 = vadd.f32 %v588_v44, %v554_v47  ;;  %v657_v57 = vsub.f32 %v653_v41, %v656_v39  ;;  %921 = vmatmul.bf16.vlgmr.msrb.gmra.mxu2 %v847_v7  ;;  %v848_v4 = vpack.c.bf16 %v1846_v13, %v1840_v12  ;;  %v654_v6 = vmul.f32 %v1983_v22, %v640_v36  ;;  %v1668_v47 = vld [vmem:[%s2340_s4 + $0x8] sm:$0xff] }
 0x1b1   :  { %v550_v62 = vadd.f32 %v549_v61, %v515_v37 }
 0x1b2   :  { %v624_v59 = vadd.f32 %v623_v52, %v589_v49  ;;  %v658_v42 = vmul.f32 %v1983_v22, %v657_v57 }
 0x1b3   :  { %v585_v53 = vadd.f32 %v584_v0, %v550_v62 }
 0x1b4   :  { %v659_v60 = vadd.f32 %v658_v42, %v624_v59 }
 0x1b5   :  { %v620_v34 = vadd.f32 %v619_v11, %v585_v53 }
 0x1b6   :  { %v664_v63 = vadd.f32 1e-05, %v659_v60 }
 0x1b7   :  { %v655_v54 = vadd.f32 %v654_v6, %v620_v34 }
 0x1b8   :  { %1755 = vrsqrt.f32 %v664_v63  ;;  %vm671_vm13 = vweird.f32 %v664_v63 }
 0x1b9   :  { %v660_v55 = vsub.f32 %v1906_v15, %v655_v54  ;;  %v661_v5 = vsub.f32 %v1904_v14, %v655_v54  ;;  %v662_v22 = vsub.f32 %v1908_v16, %v655_v54  ;;  %v663_v23 = vsub.f32 %v1919_v28, %v655_v54  ;;  %v1667_v16 = vld [vmem:[%s2340_s4] sm:$0xff] }
 0x1be   :  { %v1756_v10 = vpop.eup %1755 }
 0x1bf   :  { %v666_v56 = vmul.f32 %v1756_v10, %v664_v63  ;;  %vm672_vm12 = vweird.f32 %v1756_v10 }
 0x1c0   :  { %926 = vmatmul.bf16.gmra.mxu2 %v848_v4  ;;  %vm673_vm14 = vmor %vm671_vm13, %vm672_vm12 }
 0x1c1   :  { %v667_v9 = vmul.f32 %v1756_v10, %v666_v56 }
 0x1c3   :  { %v668_v17 = vmul.f32 0.5, %v667_v9 }
 0x1c5   :  { %v669_v58 = vsub.f32 1.5, %v668_v17 }
 0x1c7   :  { %v670_v18 = vmul.f32 %v1756_v10, %v669_v58 }
 0x1c9   :  { %v674_v1 = vsel %vm673_vm14, %v1756_v10, %v670_v18 }
 0x1ca   :  { %v675_v19 = vmul.f32 %v674_v1, %v660_v55  ;;  %v676_v20 = vmul.f32 %v674_v1, %v661_v5  ;;  %v677_v26 = vmul.f32 %v674_v1, %v662_v22  ;;  %v678_v27 = vmul.f32 %v674_v1, %v663_v23 }
 0x1cc   :  { %v679_v8 = vmax.f32 %v675_v19, 0.0  ;;  %v680_v12 = vmax.f32 %v676_v20, 0.0  ;;  %v681_v30 = vmax.f32 %v677_v26, 0.0  ;;  %v682_v21 = vmax.f32 %v678_v27, 0.0 }
 0x1ce   :  { %v691_v13 = vpack.c.bf16 %v680_v12, %v679_v8  ;;  %v692_v32 = vpack.c.bf16 %v682_v21, %v681_v30 }
 0x1d0   :  { %765 = vmatmul.bf16.vlgmr.msra.gmra.mxu3 %v691_v13 }
 0x1e0   :  { %770 = vmatmul.bf16.gmra.mxu3 %v692_v32 }
 0x233   :  { %v922_v15 = vpop.f32.mrf.mxu2 }
 0x234   :  { %v932_v14 = vpack.c.bf16 %v922_v15, %v922_v15 }
 0x236   :  { %v938_v33 = vunpack.c.l.b16 %v932_v14 }
 0x23b   :  { %v924_v43 = vpop.f32.mrf.mxu2 }
 0x23c   :  { %v933_v24 = vpack.c.bf16 %v924_v43, %v924_v43 }
 0x23e   :  { %v939_v35 = vunpack.c.l.b16 %v933_v24 }
 0x240   :  { %v940_v45 = vpack.c.b16 %v939_v35, %v938_v33 }
 0x242   :  { %949 = vmatpush.bf16.msrb.mxu3 %v940_v45 }
 0x243   :  { %v927_v28 = vpop.f32.mrf.mxu2 }
 0x244   :  { %v934_v36 = vpack.c.bf16 %v927_v28, %v927_v28 }
 0x245   :  { %1635 = vmatmul.msk.bf16.vlgmr.msrb.gmra.mxu3 %vm796_vm15, %v1667_v16 }
 0x246   :  { %v963_v41 = vunpack.c.l.b16 %v934_v36 }
 0x24b   :  { %v929_v46 = vpop.f32.mrf.mxu2 }
 0x24c   :  { %v935_v25 = vpack.c.bf16 %v929_v46, %v929_v46 }
 0x24e   :  { %v964_v38 = vunpack.c.l.b16 %v935_v25 }
 0x250   :  { %v965_v50 = vpack.c.b16 %v964_v38, %v963_v41 }
 0x253   :  { %v766_v31 = vpop.f32.mrf.mxu3 }
 0x254   :  { %v776_v44 = vpack.c.bf16 %v766_v31, %v766_v31 }
 0x255   :  { %1636 = vmatmul.msk.bf16.gmra.mxu3 %vm796_vm15, %v1668_v47 }
 0x256   :  { %v792_v39 = vunpack.c.l.b16 %v776_v44 }
 0x25b   :  { %v768_v2 = vpop.f32.mrf.mxu3 }
 0x25c   :  { %v777_v48 = vpack.c.bf16 %v768_v2, %v768_v2 }
 0x25e   :  { %v793_v49 = vunpack.c.l.b16 %v777_v48 }
 0x260   :  { %v794_v51 = vpack.c.b16 %v793_v49, %v792_v39 }
 0x262   :  { %810 = vmatpush.bf16.msrb.mxu0 %v794_v51  ;;  %1685 = vmatpush.bf16.msrb.mxu1 %v794_v51 }
 0x263   :  { %v771_v52 = vpop.f32.mrf.mxu3 }
 0x264   :  { %v778_v57 = vpack.c.bf16 %v771_v52, %v771_v52 }
 0x265   :  { %1600 = vmatmul.msk.bf16.vlgmr.msrb.gmra.mxu1 %vm796_vm15, %v1668_v47  ;;  %1599 = vmatmul.msk.bf16.vlgmr.msrb.gmra.mxu0 %vm796_vm15, %v1667_v16 }
 0x266   :  { %974 = vmatpush.bf16.msra.mxu0 %v965_v50  ;;  %v824_v59 = vunpack.c.l.b16 %v778_v57 }
 0x26b   :  { %v773_v7 = vpop.f32.mrf.mxu3 }
 0x26c   :  { %v779_v40 = vpack.c.bf16 %v773_v7, %v773_v7 }
 0x26e   :  { %v825_v42 = vunpack.c.l.b16 %v779_v40 }
 0x270   :  { %v826_v37 = vpack.c.b16 %v825_v42, %v824_v59  ;;  %v1024_v42 = vand.u32 3, %v1921_v29 }
 0x272   :  { %835 = vmatpush.bf16.msra.mxu1 %v826_v37  ;;  %vm1109_vm0 = vcmp.eq.s32.totalorder %v1024_v42, 2  ;;  %vm1074_vm1 = vcmp.eq.s32.totalorder %v1024_v42, 1  ;;  %vm1032_vm2 = vcmp.eq.s32.totalorder %v1024_v42, 0  ;;  %vm1144_vm3 = vcmp.eq.s32.totalorder %v1024_v42, 3 }
 0x273   :  { %v2202_v29 = vsel %vm1074_vm1, 1.0, %v1763_v3 }
 0x275   :  { %1601 = vmatmul.msk.bf16.vlgmr.msra.gmra.mxu1 %vm796_vm15, %v1667_v16  ;;  %1637 = vmatmul.msk.bf16.vlgmr.msra.gmra.mxu0 %vm796_vm15, %v1667_v16 }
 0x285   :  { %1602 = vmatmul.msk.bf16.gmra.mxu1 %vm796_vm15, %v1668_v47  ;;  %1638 = vmatmul.msk.bf16.gmra.mxu0 %vm796_vm15, %v1668_v47 }
 0x2c8   :  { %v2117_v60 = vpop.f32.mrf.mxu3 }
 0x2c9   :  { %v1219_v4 = vmul.f32 %v2117_v60, %v2117_v60 }
 0x2d0   :  { %v2123_v62 = vpop.f32.mrf.mxu3 }
 0x2d1   :  { %v1206_v34 = vadd.f32 %v2123_v62, %v2117_v60  ;;  %v1220_v9 = vmul.f32 %v2123_v62, %v2123_v62 }
 0x2d3   :  { %v1227_v1 = vadd.f32 %v1220_v9, %v1219_v4 }
 0x2d8   :  { %v2129_v10 = vpop.f32.mrf.mxu3 }
 0x2d9   :  { %v1207_v54 = vadd.f32 %v1206_v34, %v2129_v10  ;;  %v1221_v19 = vmul.f32 %v2129_v10, %v2129_v10 }
 0x2db   :  { %v1228_v22 = vadd.f32 %v1227_v1, %v1221_v19 }
 0x2e0   :  { %v2146_v58 = vpop.f32.mrf.mxu3 }
 0x2e1   :  { %v1208_v8 = vadd.f32 %v1207_v54, %v2146_v58  ;;  %v1222_v23 = vmul.f32 %v2146_v58, %v2146_v58 }
 0x2e2   :  { %v2119_v61 = vpop.f32.mrf.mxu1  ;;  %v2121_v63 = vpop.f32.mrf.mxu0 }
 0x2e3   :  { %v999_v6 = vmul.f32 %v2121_v63, %v2121_v63  ;;  %v1001_v12 = vmul.f32 %v2119_v61, %v2119_v61  ;;  %v1229_v24 = vadd.f32 %v1228_v22, %v1222_v23 }
 0x2ea   :  { %v2125_v0 = vpop.f32.mrf.mxu1  ;;  %v2127_v53 = vpop.f32.mrf.mxu0 }
 0x2eb   :  { %v1000_v17 = vmul.f32 %v2127_v53, %v2127_v53  ;;  %v986_v5 = vadd.f32 %v2127_v53, %v2121_v63  ;;  %v1002_v32 = vmul.f32 %v2125_v0, %v2125_v0 }
 0x2ed   :  { %v1007_v20 = vadd.f32 %v1000_v17, %v999_v6  ;;  %v987_v13 = vadd.f32 %v986_v5, %v2119_v61 }
 0x2ef   :  { %v1008_v26 = vadd.f32 %v1007_v20, %v1001_v12  ;;  %v988_v15 = vadd.f32 %v987_v13, %v2125_v0  ;;  %v2199_v12 = vsel %vm1109_vm0, 1.0, %v1763_v3 }
 0x2f1   :  { %v1009_v35 = vadd.f32 %v1008_v26, %v1002_v32  ;;  %v2205_v26 = vsel %vm1032_vm2, 1.0, %v1763_v3 }
 0x2f2   :  { %v2131_v11 = vpop.f32.mrf.mxu1  ;;  %v2133_v56 = vpop.f32.mrf.mxu0 }
 0x2f3   :  { %v1209_v27 = vadd.f32 %v1208_v8, %v2133_v56  ;;  %v1003_v14 = vmul.f32 %v2131_v11, %v2131_v11  ;;  %v1223_v43 = vmul.f32 %v2133_v56, %v2133_v56  ;;  %v989_v33 = vadd.f32 %v988_v15, %v2131_v11 }
 0x2f5   :  { %v1010_v28 = vadd.f32 %v1009_v35, %v1003_v14  ;;  %v1230_v36 = vadd.f32 %v1229_v24, %v1223_v43 }
 0x2fa   :  { %v2148_v18 = vpop.f32.mrf.mxu1  ;;  %v2150_v55 = vpop.f32.mrf.mxu0 }
 0x2fb   :  { %v1004_v45 = vmul.f32 %v2148_v18, %v2148_v18  ;;  %v1210_v16 = vadd.f32 %v1209_v27, %v2150_v55  ;;  %v990_v31 = vadd.f32 %v989_v33, %v2148_v18  ;;  %v1224_v47 = vmul.f32 %v2150_v55, %v2150_v55 }
 0x2fd   :  { %v1011_v25 = vadd.f32 %v1010_v28, %v1004_v45  ;;  %v1231_v52 = vadd.f32 %v1230_v36, %v1224_v47 }
 0x302   :  { %v2163_v30 = vpop.f32.mrf.mxu1  ;;  %v2165_v21 = vpop.f32.mrf.mxu0 }
 0x303   :  { %v1005_v46 = vmul.f32 %v2163_v30, %v2163_v30  ;;  %v991_v44 = vadd.f32 %v990_v31, %v2163_v30  ;;  %v1211_v2 = vadd.f32 %v1210_v16, %v2165_v21  ;;  %v1225_v51 = vmul.f32 %v2165_v21, %v2165_v21 }
 0x304   :  { %v2214_v16 = vsel %vm1144_vm3, 1.0, %v1763_v3 }
 0x305   :  { %v1012_v48 = vadd.f32 %v1011_v25, %v1005_v46  ;;  %v1232_v9 = vadd.f32 %v1231_v52, %v1225_v51 }
 0x30a   :  { %v2185_v41 = vpop.f32.mrf.mxu1  ;;  %v2187_v38 = vpop.f32.mrf.mxu0 }
 0x30b   :  { %v992_v39 = vadd.f32 %v991_v44, %v2185_v41  ;;  %v1006_v49 = vmul.f32 %v2185_v41, %v2185_v41  ;;  %v1212_v50 = vadd.f32 %v1211_v2, %v2187_v38  ;;  %v1226_v59 = vmul.f32 %v2187_v38, %v2187_v38 }
 0x30d   :  { %v993_v57 = vrot.slane %v992_v39, 4  ;;  %v1013_v7 = vadd.f32 %v1012_v48, %v1006_v49  ;;  %v1213_v40 = vrot.slane %v1212_v50, 4  ;;  %v1233_v54 = vadd.f32 %v1232_v9, %v1226_v59 }
 0x30f   :  { %v994_v37 = vadd.f32 %v993_v57, %v992_v39  ;;  %v1014_v34 = vrot.slane %v1013_v7, 4  ;;  %v1214_v4 = vadd.f32 %v1213_v40, %v1212_v50  ;;  %v1234_v8 = vrot.slane %v1233_v54, 4 }
 0x311   :  { %v995_v6 = vrot.slane %v994_v37, 2  ;;  %v1215_v17 = vrot.slane %v1214_v4, 2  ;;  %v1015_v1 = vadd.f32 %v1014_v34, %v1013_v7  ;;  %v1235_v15 = vadd.f32 %v1234_v8, %v1233_v54 }
 0x313   :  { %v996_v5 = vadd.f32 %v995_v6, %v994_v37  ;;  %v1216_v19 = vadd.f32 %v1215_v17, %v1214_v4  ;;  %v1016_v22 = vrot.slane %v1015_v1, 2  ;;  %v1236_v31 = vrot.slane %v1235_v15, 2 }
 0x315   :  { %v997_v20 = vrot.slane %v996_v5, 1  ;;  %v1217_v23 = vrot.slane %v1216_v19, 1  ;;  %v1017_v43 = vadd.f32 %v1016_v22, %v1015_v1  ;;  %v1237_v44 = vadd.f32 %v1236_v31, %v1235_v15 }
 0x317   :  { %v998_v13 = vadd.f32 %v997_v20, %v996_v5  ;;  %v1218_v24 = vadd.f32 %v1217_v23, %v1216_v19  ;;  %v1018_v28 = vrot.slane %v1017_v43, 1  ;;  %v1238_v3 = vrot.slane %v1237_v44, 1 }
 0x319   :  { %v1112_v27 = vmul.f32 %v2199_v12, %v998_v13  ;;  %v1077_v32 = vmul.f32 %v2202_v29, %v998_v13  ;;  %v1035_v14 = vmul.f32 %v2205_v26, %v998_v13  ;;  %v1272_v46 = vmul.f32 %v2202_v29, %v1218_v24 }
 0x31a   :  { %v1240_v47 = vmul.f32 %v2205_v26, %v1218_v24  ;;  %v1147_v36 = vmul.f32 %v2214_v16, %v998_v13  ;;  %v1019_v25 = vadd.f32 %v1018_v28, %v1017_v43  ;;  %v1304_v51 = vmul.f32 %v2199_v12, %v1218_v24 }
 0x31b   :  { %v1113_v33 = vsel %vm376_vm5, %v1112_v27, 0.0  ;;  %v1078_v35 = vsel %vm376_vm5, %v1077_v32, 0.0  ;;  %v1036_v45 = vsel %vm376_vm5, %v1035_v14, 0.0  ;;  %v1273_v2 = vsel %vm376_vm5, %v1272_v46, 0.0 }
 0x31c   :  { %1114 = vadd.xlane.f32.xlu2 %v1113_v33  ;;  %1079 = vadd.xlane.f32.xlu0 %v1078_v35  ;;  %v1241_v48 = vsel %vm376_vm5, %v1240_v47, 0.0  ;;  %v1148_v39 = vsel %vm376_vm5, %v1147_v36, 0.0  ;;  %v1055_v49 = vmul.f32 %v2205_v26, %v1019_v25  ;;  %v1125_v50 = vmul.f32 %v2199_v12, %v1019_v25 }
 0x31d   :  { %1037 = vadd.xlane.f32.xlu1 %v1036_v45  ;;  %v1239_v52 = vadd.f32 %v1238_v3, %v1237_v44  ;;  %v1305_v40 = vsel %vm376_vm5, %v1304_v51, 0.0  ;;  %v1160_v59 = vmul.f32 %v2214_v16, %v1019_v25  ;;  %v1090_v37 = vmul.f32 %v2202_v29, %v1019_v25 }
 0x31e   :  { %v1056_v57 = vsel %vm376_vm5, %v1055_v49, 0.0  ;;  %v1126_v7 = vsel %vm376_vm5, %v1125_v50, 0.0  ;;  %v1336_v17 = vmul.f32 %v2214_v16, %v1218_v24 }
 0x31f   :  { %v1285_v42 = vmul.f32 %v2202_v29, %v1239_v52  ;;  %v1161_v34 = vsel %vm376_vm5, %v1160_v59, 0.0  ;;  %v1091_v9 = vsel %vm376_vm5, %v1090_v37, 0.0  ;;  %v1317_v6 = vmul.f32 %v2199_v12, %v1239_v52 }
 0x320   :  { %v1253_v54 = vmul.f32 %v2205_v26, %v1239_v52  ;;  %v1337_v1 = vsel %vm376_vm5, %v1336_v17, 0.0  ;;  %v1349_v20 = vmul.f32 %v2214_v16, %v1239_v52 }
 0x321   :  { %v1286_v4 = vsel %vm376_vm5, %v1285_v42, 0.0  ;;  %v1318_v5 = vsel %vm376_vm5, %v1317_v6, 0.0 }
 0x322   :  { %v1254_v19 = vsel %vm376_vm5, %v1253_v54, 0.0  ;;  %v1350_v8 = vsel %vm376_vm5, %v1349_v20, 0.0 }
 0x324   :  { %1274 = vadd.xlane.f32.xlu2 %v1273_v2  ;;  %1242 = vadd.xlane.f32.xlu0 %v1241_v48 }
 0x325   :  { %1149 = vadd.xlane.f32.xlu1 %v1148_v39 }
 0x32c   :  { %1057 = vadd.xlane.f32.xlu2 %v1056_v57  ;;  %1127 = vadd.xlane.f32.xlu0 %v1126_v7 }
 0x32d   :  { %1306 = vadd.xlane.f32.xlu1 %v1305_v40 }
 0x334   :  { %1162 = vadd.xlane.f32.xlu2 %v1161_v34  ;;  %1287 = vadd.xlane.f32.xlu0 %v1286_v4 }
 0x335   :  { %1092 = vadd.xlane.f32.xlu1 %v1091_v9 }
 0x33c   :  { %1319 = vadd.xlane.f32.xlu2 %v1318_v5  ;;  %1338 = vadd.xlane.f32.xlu0 %v1337_v1 }
 0x33d   :  { %1255 = vadd.xlane.f32.xlu1 %v1254_v19 }
 0x345   :  { %1351 = vadd.xlane.f32.xlu1 %v1350_v8 }
 0x38f   :  { %v1115_v13 = vpop.xlane.xlu2 %1114  ;;  %v1080_v22 = vpop.xlane.xlu0 %1079 }
 0x390   :  { %v1038_v23 = vpop.xlane.xlu1 %1037  ;;  %v1081_v14 = vrot.slane %v1080_v22, 4  ;;  %v1116_v46 = vrot.slane %v1115_v13, 4 }
 0x391   :  { %v1039_v27 = vrot.slane %v1038_v23, 4 }
 0x392   :  { %v1082_v28 = vadd.f32 %v1081_v14, %v1080_v22  ;;  %v1117_v49 = vadd.f32 %v1116_v46, %v1115_v13 }
 0x393   :  { %v1040_v32 = vadd.f32 %v1039_v27, %v1038_v23 }
 0x394   :  { %v1083_v47 = vrot.slane %v1082_v28, 2  ;;  %v1118_v59 = vrot.slane %v1117_v49, 2 }
 0x395   :  { %v1041_v15 = vrot.slane %v1040_v32, 2 }
 0x396   :  { %v1084_v50 = vadd.f32 %v1083_v47, %v1082_v28 }
 0x397   :  { %v1275_v43 = vpop.xlane.xlu2 %1274  ;;  %v1243_v24 = vpop.xlane.xlu0 %1242  ;;  %v1042_v33 = vadd.f32 %v1041_v15, %v1040_v32  ;;  %v1119_v15 = vadd.f32 %v1118_v59, %v1117_v49 }
 0x398   :  { %v1150_v35 = vpop.xlane.xlu1 %1149  ;;  %v1244_v51 = vrot.slane %v1243_v24, 4  ;;  %v1276_v42 = vrot.slane %v1275_v43, 4  ;;  %v1085_v4 = vrot.slane %v1084_v50, 1 }
 0x399   :  { %v1043_v45 = vrot.slane %v1042_v33, 1  ;;  %v1151_v39 = vrot.slane %v1150_v35, 4 }
 0x39a   :  { %v1245_v9 = vadd.f32 %v1244_v51, %v1243_v24  ;;  %v1277_v23 = vadd.f32 %v1276_v42, %v1275_v43  ;;  %v1086_v32 = vadd.f32 %v1085_v4, %v1084_v50 }
 0x39b   :  { %v1044_v31 = vadd.f32 %v1043_v45, %v1042_v33  ;;  %v1152_v7 = vadd.f32 %v1151_v39, %v1150_v35 }
 0x39c   :  { %v1246_v14 = vrot.slane %v1245_v9, 2  ;;  %v1278_v47 = vrot.slane %v1277_v23, 2 }
 0x39d   :  { %1718 = vpush %v1044_v31  ;;  %v1153_v20 = vrot.slane %v1152_v7, 2 }
 0x39e   :  { %v1247_v49 = vadd.f32 %v1246_v14, %v1245_v9 }
 0x39f   :  { %v1058_v36 = vpop.xlane.xlu2 %1057  ;;  %v1128_v25 = vpop.xlane.xlu0 %1127  ;;  %v1154_v31 = vadd.f32 %v1153_v20, %v1152_v7 }
 0x3a0   :  { %v1059_v44 = vrot.slane %v1058_v36, 4  ;;  %v1129_v2 = vrot.slane %v1128_v25, 4  ;;  %v1307_v48 = vpop.xlane.xlu1 %1306 }
 0x3a1   :  { %v1308_v8 = vrot.slane %v1307_v48, 4 }
 0x3a2   :  { %v1060_v3 = vadd.f32 %v1059_v44, %v1058_v36  ;;  %v1130_v57 = vadd.f32 %v1129_v2, %v1128_v25  ;;  %v1120_v2 = vrot.slane %v1119_v15, 1 }
 0x3a3   :  { %v1309_v28 = vadd.f32 %v1308_v8, %v1307_v48  ;;  %v1155_v48 = vrot.slane %v1154_v31, 1 }
 0x3a4   :  { %v1061_v52 = vrot.slane %v1060_v3, 2  ;;  %v1131_v6 = vrot.slane %v1130_v57, 2  ;;  %v1121_v4 = vadd.f32 %v1120_v2, %v1119_v15 }
 0x3a5   :  { %v1310_v59 = vrot.slane %v1309_v28, 2 }
 0x3a6   :  { %v1062_v40 = vadd.f32 %v1061_v52, %v1060_v3  ;;  %v1132_v35 = vadd.f32 %v1131_v6, %v1130_v57 }
 0x3a7   :  { %v1163_v37 = vpop.xlane.xlu2 %1162  ;;  %v1288_v34 = vpop.xlane.xlu0 %1287 }
 0x3a8   :  { %v1164_v17 = vrot.slane %v1163_v37, 4  ;;  %v1093_v54 = vpop.xlane.xlu1 %1092  ;;  %v1063_v5 = vrot.slane %v1062_v40, 1  ;;  %v1289_v1 = vrot.slane %v1288_v34, 4  ;;  %v1133_v50 = vrot.slane %v1132_v35, 1 }
 0x3a9   :  { %v1094_v19 = vrot.slane %v1093_v54, 4 }
 0x3aa   :  { %v1165_v13 = vadd.f32 %v1164_v17, %v1163_v37  ;;  %v1064_v22 = vadd.f32 %v1063_v5, %v1062_v40  ;;  %v1290_v45 = vadd.f32 %v1289_v1, %v1288_v34  ;;  %v1279_v5 = vadd.f32 %v1278_v47, %v1277_v23 }
 0x3ab   :  { %v1095_v27 = vadd.f32 %v1094_v19, %v1093_v54  ;;  %v1248_v54 = vrot.slane %v1247_v49, 1  ;;  %v1134_v19 = vadd.f32 %v1133_v50, %v1132_v35 }
 0x3ac   :  { %v1166_v33 = vrot.slane %v1165_v13, 2  ;;  %1720 = vpush %v1064_v22  ;;  %v1291_v51 = vrot.slane %v1290_v45, 2  ;;  %v1156_v22 = vadd.f32 %v1155_v48, %v1154_v31  ;;  %v1280_v15 = vrot.slane %v1279_v5, 1 }
 0x3ad   :  { %v1096_v24 = vrot.slane %v1095_v27, 2  ;;  %1722 = vpush %v1086_v32  ;;  %v1249_v14 = vadd.f32 %v1248_v54, %v1247_v49 }
 0x3ae   :  { %v1167_v46 = vadd.f32 %v1166_v33, %v1165_v13  ;;  %v1292_v9 = vadd.f32 %v1291_v51, %v1290_v45  ;;  %v1765_v51 = vmov 2048.0  }
 0x3af   :  { %v1320_v36 = vpop.xlane.xlu2 %1319  ;;  %v1339_v25 = vpop.xlane.xlu0 %1338  ;;  %v1097_v44 = vadd.f32 %v1096_v24, %v1095_v27  ;;  %v1311_v27 = vadd.f32 %v1310_v59, %v1309_v28  ;;  %1757 = vrcp.f32 %v1765_v51 }
 0x3b0   :  { %v1321_v39 = vrot.slane %v1320_v36, 4  ;;  %v1340_v43 = vrot.slane %v1339_v25, 4  ;;  %v1256_v3 = vpop.xlane.xlu1 %1255  ;;  %v1168_v57 = vrot.slane %v1167_v46, 1  ;;  %v1293_v23 = vrot.slane %v1292_v9, 1 }
 0x3b1   :  { %v1257_v52 = vrot.slane %v1256_v3, 4  ;;  %v1098_v40 = vrot.slane %v1097_v44, 1  ;;  %v1312_v35 = vrot.slane %v1311_v27, 1 }
 0x3b2   :  { %v1322_v42 = vadd.f32 %v1321_v39, %v1320_v36  ;;  %v1341_v37 = vadd.f32 %v1340_v43, %v1339_v25  ;;  %v1169_v20 = vadd.f32 %v1168_v57, %v1167_v46  ;;  %v1294_v28 = vadd.f32 %v1293_v23, %v1292_v9 }
 0x3b3   :  { %v1258_v7 = vadd.f32 %v1257_v52, %v1256_v3  ;;  %v1099_v34 = vadd.f32 %v1098_v40, %v1097_v44  ;;  %v1281_v44 = vadd.f32 %v1280_v15, %v1279_v5  ;;  %v1313_v39 = vadd.f32 %v1312_v35, %v1311_v27 }
 0x3b4   :  { %v1323_v6 = vrot.slane %v1322_v42, 2  ;;  %v1342_v17 = vrot.slane %v1341_v37, 2 }
 0x3b5   :  { %v1259_v1 = vrot.slane %v1258_v7, 2  ;;  %1724 = vpush %v1099_v34  ;;  %v1758_v52 = vpop.eup %1757 }
 0x3b6   :  { %v1324_v8 = vadd.f32 %v1323_v6, %v1322_v42  ;;  %v1343_v13 = vadd.f32 %v1342_v17, %v1341_v37  ;;  %1726 = vpush %v1121_v4  ;;  %v1048_v40 = vmul.f32 2048.0, %v1758_v52  ;;  %vm1052_vm4 = vweird.f32 %v1758_v52 }
 0x3b7   :  { %1728 = vpush %v1134_v19  ;;  %v1260_v32 = vadd.f32 %v1259_v1, %v1258_v7 }
 0x3b8   :  { %1730 = vpush %v1156_v22  ;;  %v1352_v33 = vpop.xlane.xlu1 %1351  ;;  %v1325_v47 = vrot.slane %v1324_v8, 1  ;;  %v1344_v46 = vrot.slane %v1343_v13, 1  ;;  %v1049_v57 = vsub.f32 1.0, %v1048_v40 }
 0x3b9   :  { %1732 = vpush %v1169_v20  ;;  %v1353_v24 = vrot.slane %v1352_v33, 4  ;;  %v1261_v36 = vrot.slane %v1260_v32, 1 }
 0x3ba   :  { %1734 = vpush %v1249_v14  ;;  %v1326_v31 = vadd.f32 %v1325_v47, %v1324_v8  ;;  %v1345_v43 = vadd.f32 %v1344_v46, %v1343_v13  ;;  %v1050_v59 = vmul.f32 %v1758_v52, %v1049_v57 }
 0x3bb   :  { %v1354_v45 = vadd.f32 %v1353_v24, %v1352_v33  ;;  %v1262_v25 = vadd.f32 %v1261_v36, %v1260_v32 }
 0x3bc   :  { %v1051_v42 = vadd.f32 %v1758_v52, %v1050_v59 }
 0x3bd   :  { %v1355_v2 = vrot.slane %v1354_v45, 2  ;;  %1736 = vpush %v1262_v25 }
 0x3be   :  { %1738 = vpush %v1281_v44  ;;  %v2242_v48 = vsel %vm1052_vm4, %v1758_v52, %v1051_v42 }
 0x3bf   :  { %v1356_v3 = vadd.f32 %v1355_v2, %v1354_v45  ;;  %1740 = vpush %v1294_v28 }
 0x3c0   :  { %1742 = vpush %v1313_v39 }
 0x3c1   :  { %1744 = vpush %v1326_v31  ;;  %v1357_v50 = vrot.slane %v1356_v3, 1 }
 0x3c2   :  { %1746 = vpush %v1345_v43 }
 0x3c3   :  { %v1358_v49 = vadd.f32 %v1357_v50, %v1356_v3 }
 0x3c5   :  { %1748 = vpush %v1358_v49 }
 0x3ce   :  { %s1719_s4 = spop %1718 }
 0x3cf   :  { %v1046_v37 = vstv %s1719_s4 }
 0x3d0   :  { %v2245_v4 = vmul.f32 %v2242_v48, %v1046_v37 }
 0x3d2   :  { %v1070_v54 = vmul.f32 %v2245_v4, %v2245_v4 }
 0x3dd   :  { %s1721_s19 = spop %1720 }
 0x3de   :  { %s1723_s20 = spop %1722  ;;  %v1066_v7 = vstv %s1721_s19 }
 0x3df   :  { %v1088_v34 = vstv %s1723_s20  ;;  %v1067_v6 = vmul.f32 %v1066_v7, %v2242_v48 }
 0x3e0   :  { %v2249_v17 = vmul.f32 %v1088_v34, %v2242_v48 }
 0x3e1   :  { %v1071_v1 = vsub.f32 %v1067_v6, %v1070_v54 }
 0x3e2   :  { %v1105_v19 = vmul.f32 %v2249_v17, %v2249_v17 }
 0x3e3   :  { %v1072_v24 = vmul.f32 %v2205_v26, %v1071_v1 }
 0x3e6   :  { %s1725_s21 = spop %1724 }
 0x3e7   :  { %v1101_v5 = vstv %s1725_s21  ;;  %s1727_s22 = spop %1726 }
 0x3e8   :  { %v1102_v20 = vmul.f32 %v1101_v5, %v2242_v48  ;;  %v1123_v9 = vstv %s1727_s22  ;;  %s1729_s1 = spop %1728 }
 0x3e9   :  { %v2257_v8 = vmul.f32 %v1123_v9, %v2242_v48  ;;  %v1136_v13 = vstv %s1729_s1  ;;  %s1731_s23 = spop %1730 }
 0x3ea   :  { %v1106_v22 = vsub.f32 %v1102_v20, %v1105_v19  ;;  %v1158_v27 = vstv %s1731_s23  ;;  %s1733_s24 = spop %1732  ;;  %v1137_v14 = vmul.f32 %v1136_v13, %v2242_v48 }
 0x3eb   :  { %v1140_v32 = vmul.f32 %v2257_v8, %v2257_v8  ;;  %v2263_v33 = vmul.f32 %v1158_v27, %v2242_v48  ;;  %v1171_v15 = vstv %s1733_s24  ;;  %s1735_s0 = spop %1734 }
 0x3ec   :  { %v1107_v36 = vmul.f32 %v2202_v29, %v1106_v22  ;;  %v1251_v23 = vstv %s1735_s0  ;;  %v1172_v46 = vmul.f32 %v1171_v15, %v2242_v48 }
 0x3ed   :  { %v1141_v47 = vsub.f32 %v1137_v14, %v1140_v32  ;;  %v1175_v35 = vmul.f32 %v2263_v33, %v2263_v33  ;;  %v1252_v2 = vmul.f32 %v1251_v23, %v2242_v48 }
 0x3ee   :  { %v1108_v45 = vadd.f32 %v1107_v36, %v1072_v24  ;;  %s1737_s25 = spop %1736 }
 0x3ef   :  { %v1142_v25 = vmul.f32 %v2199_v12, %v1141_v47  ;;  %v1176_v44 = vsub.f32 %v1172_v46, %v1175_v35  ;;  %v1264_v28 = vstv %s1737_s25  ;;  %s1739_s26 = spop %1738  ;;  %v1268_v49 = vmul.f32 %v1252_v2, %v1252_v2 }
 0x3f0   :  { %s1741_s27 = spop %1740  ;;  %v1283_v43 = vstv %s1739_s26  ;;  %v1265_v3 = vmul.f32 %v1264_v28, %v2242_v48  ;;  %v1103_v46 = vmul.f32 %v2202_v29, %v2249_v17  ;;  %v1138_v28 = vmul.f32 %v2199_v12, %v2257_v8 }
 0x3f1   :  { %v1143_v31 = vadd.f32 %v1142_v25, %v1108_v45  ;;  %v1177_v39 = vmul.f32 %v2214_v16, %v1176_v44  ;;  %s1743_s28 = spop %1742  ;;  %v1284_v51 = vmul.f32 %v1283_v43, %v2242_v48  ;;  %v1296_v52 = vstv %s1741_s27 }
 0x3f2   :  { %s1745_s29 = spop %1744  ;;  %v1315_v40 = vstv %s1743_s28  ;;  %v1269_v37 = vsub.f32 %v1265_v3, %v1268_v49  ;;  %v1297_v34 = vmul.f32 %v1296_v52, %v2242_v48  ;;  %v1068_v44 = vmul.f32 %v2205_v26, %v2245_v4 }
 0x3f3   :  { %v1178_v50 = vadd.f32 %v1177_v39, %v1143_v31  ;;  %s1747_s30 = spop %1746  ;;  %v1328_v57 = vstv %s1745_s29  ;;  %v1316_v42 = vmul.f32 %v1315_v40, %v2242_v48  ;;  %v1300_v7 = vmul.f32 %v1284_v51, %v1284_v51 }
 0x3f4   :  { %v1347_v6 = vstv %s1747_s30  ;;  %v1329_v5 = vmul.f32 %v1328_v57, %v2242_v48  ;;  %v1270_v22 = vmul.f32 %v2205_v26, %v1269_v37  ;;  %v1298_v45 = vmul.f32 %v2202_v29, %v1284_v51 }
 0x3f5   :  { %v1187_v59 = vadd.f32 1e-05, %v1178_v50  ;;  %v1332_v54 = vmul.f32 %v1316_v42, %v1316_v42  ;;  %v1301_v1 = vsub.f32 %v1297_v34, %v1300_v7  ;;  %v1348_v19 = vmul.f32 %v1347_v6, %v2242_v48 }
 0x3f6   :  { %s1749_s6 = spop %1748  ;;  %v1266_v31 = vmul.f32 %v2205_v26, %v1252_v2  ;;  %v1104_v43 = vadd.f32 %v1103_v46, %v1068_v44  ;;  %v1330_v17 = vmul.f32 %v2199_v12, %v1316_v42 }
 0x3f7   :  { %1759 = vrsqrt.f32 %v1187_v59  ;;  %v1360_v20 = vstv %s1749_s6  ;;  %v1333_v9 = vsub.f32 %v1329_v5, %v1332_v54  ;;  %v1302_v27 = vmul.f32 %v2202_v29, %v1301_v1 }
 0x3f8   :  { %v1361_v13 = vmul.f32 %v1360_v20, %v2242_v48  ;;  %v1364_v32 = vmul.f32 %v1348_v19, %v1348_v19  ;;  %v1299_v3 = vadd.f32 %v1298_v45, %v1266_v31  ;;  %v1139_v49 = vadd.f32 %v1138_v28, %v1104_v43 }
 0x3f9   :  { %v1303_v14 = vadd.f32 %v1302_v27, %v1270_v22  ;;  %v1334_v15 = vmul.f32 %v2199_v12, %v1333_v9  ;;  %v1173_v29 = vmul.f32 %v2214_v16, %v2263_v33  ;;  %v1362_v57 = vmul.f32 %v2214_v16, %v1348_v19 }
 0x3fa   :  { %v1365_v24 = vsub.f32 %v1361_v13, %v1364_v32  ;;  %v1331_v51 = vadd.f32 %v1330_v17, %v1299_v3  ;;  %vm1194_vm6 = vweird.f32 %v1187_v59 }
 0x3fb   :  { %v1335_v47 = vadd.f32 %v1334_v15, %v1303_v14  ;;  %v1174_v4 = vadd.f32 %v1173_v29, %v1139_v49 }
 0x3fc   :  { %v1366_v35 = vmul.f32 %v2214_v16, %v1365_v24  ;;  %v1363_v37 = vadd.f32 %v1362_v57, %v1331_v51 }
 0x3fd   :  { %v1760_v36 = vpop.eup %1759  ;;  %v1179_v7 = vsub.f32 %v2121_v63, %v1174_v4  ;;  %v1180_v34 = vsub.f32 %v2127_v53, %v1174_v4  ;;  %v1181_v12 = vsub.f32 %v2119_v61, %v1174_v4  ;;  %v1182_v42 = vsub.f32 %v2125_v0, %v1174_v4 }
 0x3fe   :  { %v1189_v23 = vmul.f32 %v1760_v36, %v1187_v59  ;;  %v1367_v48 = vadd.f32 %v1366_v35, %v1335_v47  ;;  %vm1195_vm5 = vweird.f32 %v1760_v36  ;;  %v1183_v33 = vsub.f32 %v2131_v11, %v1174_v4 }
 0x3ff   :  { %v1184_v54 = vsub.f32 %v2148_v18, %v1174_v4  ;;  %v1185_v16 = vsub.f32 %v2163_v30, %v1174_v4  ;;  %v1186_v5 = vsub.f32 %v2185_v41, %v1174_v4  ;;  %vm1196_vm7 = vmor %vm1194_vm6, %vm1195_vm5  ;;  %v1368_v1 = vsub.f32 %v2117_v60, %v1363_v37 }
 0x400   :  { %v1190_v25 = vmul.f32 %v1760_v36, %v1189_v23  ;;  %v1376_v39 = vadd.f32 1e-05, %v1367_v48  ;;  %v1369_v53 = vsub.f32 %v2123_v62, %v1363_v37  ;;  %v1370_v61 = vsub.f32 %v2129_v10, %v1363_v37 }
 0x401   :  { %v1371_v0 = vsub.f32 %v2146_v58, %v1363_v37  ;;  %v1372_v11 = vsub.f32 %v2133_v56, %v1363_v37  ;;  %v1373_v18 = vsub.f32 %v2150_v55, %v1363_v37  ;;  %v1374_v30 = vsub.f32 %v2165_v21, %v1363_v37 }
 0x402   :  { %1761 = vrsqrt.f32 %v1376_v39  ;;  %v1191_v50 = vmul.f32 0.5, %v1190_v25  ;;  %v1375_v41 = vsub.f32 %v2187_v38, %v1363_v37  ;;  %vm1383_vm9 = vweird.f32 %v1376_v39 }
 0x404   :  { %v1192_v52 = vsub.f32 1.5, %v1191_v50 }
 0x406   :  { %v1193_v26 = vmul.f32 %v1760_v36, %v1192_v52 }
 0x408   :  { %v1762_v40 = vpop.eup %1761  ;;  %v1197_v63 = vsel %vm1196_vm7, %v1760_v36, %v1193_v26 }
 0x409   :  { %v1378_v8 = vmul.f32 %v1762_v40, %v1376_v39  ;;  %vm1384_vm8 = vweird.f32 %v1762_v40  ;;  %v1198_v60 = vmul.f32 %v1197_v63, %v1179_v7  ;;  %v1199_v20 = vmul.f32 %v1197_v63, %v1180_v34 }
 0x40a   :  { %v1200_v9 = vmul.f32 %v1197_v63, %v1181_v12  ;;  %v1201_v62 = vmul.f32 %v1197_v63, %v1182_v42  ;;  %vm1385_vm10 = vmor %vm1383_vm9, %vm1384_vm8  ;;  %v1202_v13 = vmul.f32 %v1197_v63, %v1183_v33  ;;  %v1203_v22 = vmul.f32 %v1197_v63, %v1184_v54 }
 0x40b   :  { %v1379_v2 = vmul.f32 %v1762_v40, %v1378_v8  ;;  %v1204_v10 = vmul.f32 %v1197_v63, %v1185_v16  ;;  %v1205_v35 = vmul.f32 %v1197_v63, %v1186_v5 }
 0x40d   :  { %v1380_v6 = vmul.f32 0.5, %v1379_v2 }
 0x40f   :  { %v1381_v19 = vsub.f32 1.5, %v1380_v6 }
 0x411   :  { %v1382_v59 = vmul.f32 %v1762_v40, %v1381_v19 }
 0x413   :  { %v1386_v27 = vsel %vm1385_vm10, %v1762_v40, %v1382_v59 }
 0x414   :  { %v1387_v58 = vmul.f32 %v1386_v27, %v1368_v1  ;;  %v1388_v32 = vmul.f32 %v1386_v27, %v1369_v53  ;;  %v1389_v56 = vmul.f32 %v1386_v27, %v1370_v61  ;;  %v1390_v14 = vmul.f32 %v1386_v27, %v1371_v0 }
 0x415   :  { %v1391_v55 = vmul.f32 %v1386_v27, %v1372_v11  ;;  %v1392_v15 = vmul.f32 %v1386_v27, %v1373_v18  ;;  %v1393_v21 = vmul.f32 %v1386_v27, %v1374_v30  ;;  %v1394_v24 = vmul.f32 %v1386_v27, %v1375_v41 }
 0x416   :  { %v1395_v38 = vadd.f32 %v1387_v58, %v1198_v60  ;;  %v1396_v36 = vadd.f32 %v1388_v32, %v1199_v20  ;;  %v1397_v23 = vadd.f32 %v1389_v56, %v1200_v9  ;;  %v1398_v47 = vadd.f32 %v1390_v14, %v1201_v62 }
 0x417   :  { %v1399_v46 = vadd.f32 %v1391_v55, %v1202_v13  ;;  %v1400_v45 = vadd.f32 %v1392_v15, %v1203_v22  ;;  %v1401_v48 = vadd.f32 %v1393_v21, %v1204_v10  ;;  %v1402_v31 = vadd.f32 %v1394_v24, %v1205_v35 }
 0x418   :  { %v1403_v25 = vmax.f32 %v1395_v38, 0.0  ;;  %v1404_v44 = vmax.f32 %v1396_v36, 0.0  ;;  %v1405_v28 = vmax.f32 %v1397_v23, 0.0  ;;  %v1406_v39 = vmax.f32 %v1398_v47, 0.0 }
 0x419   :  { %v1407_v43 = vmax.f32 %v1399_v46, 0.0  ;;  %v1408_v3 = vmax.f32 %v1400_v45, 0.0  ;;  %v1409_v50 = vmax.f32 %v1401_v48, 0.0  ;;  %v1410_v49 = vmax.f32 %v1402_v31, 0.0 }
 0x41a   :  { %1411 = vst [vmem:[%s2341_s5] sm:$0xff] %v1403_v25 }
 0x41b   :  { %1412 = vst [vmem:[%s2341_s5 + $0x8] sm:$0xff] %v1404_v44 }
 0x41c   :  { %1413 = vst [vmem:[%s2341_s5 + $0x10] sm:$0xff] %v1405_v28 }
 0x41d   :  { %1414 = vst [vmem:[%s2341_s5 + $0x18] sm:$0xff] %v1406_v39 }
 0x41e   :  { %1415 = vst [vmem:[%s2341_s5 + $0x20] sm:$0xff] %v1407_v43 }
 0x41f   :  { %1416 = vst [vmem:[%s2341_s5 + $0x28] sm:$0xff] %v1408_v3 }
 0x420   :  { %1417 = vst [vmem:[%s2341_s5 + $0x30] sm:$0xff] %v1409_v50 }
 0x421   :  { %1418 = vst [vmem:[%s2341_s5 + $0x38] sm:$0xff] %v1410_v49 }

</bundles_post_ra>
